<compile_context>
chip_gen: v7x
topology: tpu7x:2x2x1
jax: 0.10.0
libtpu: 0.0.40
codegen_flags: <defaults>
</compile_context>

<pallas_src>
import jax
import jax.numpy as jnp
from jax.experimental import pallas as pl
from jax.experimental.pallas import tpu as pltpu


def _r8(n):
    return ((n + 7) // 8) * 8


def _layer_norm(v, g, b, eps=1e-12):
    mu = jnp.mean(v, axis=-1, keepdims=True)
    var = jnp.mean((v - mu) ** 2, axis=-1, keepdims=True)
    return (v - mu) * jax.lax.rsqrt(var + eps) * g + b


def _bilstm_recurrence(gate_in, whh, B, R):
    """Fused fwd+bwd LSTM recurrence.

    Gate columns are interleaved per gate: [i_f i_b | f_f f_b | o_f o_b |
    g_f g_b] (each block R wide), so h and c live as single lane-contiguous
    (B, 2R) arrays and each step needs one sigmoid + two tanh EUP issues.

    gate_in[t]: (B, 8R) pre-activations (input projection + bias folded):
                fwd gates at time t, bwd gates at time S-1-t (time reversal
                already folded, off the serial chain).
    whh:        (2R, 8R) recurrent weights, rows = [h_f | h_b], block
                structure (fwd rows only feed fwd columns) baked in.
    Returns list of S (B, 2R) outputs: out[t] = [h_f(t) | h_b(t)].
    """
    S = len(gate_in)
    R2, R4, R6, R8 = 2 * R, 4 * R, 6 * R, 8 * R
    h = jnp.zeros((B, R2), jnp.float32)
    c = jnp.zeros((B, R2), jnp.float32)
    outs_f = [None] * S
    outs_b = [None] * S
    for t in range(S):                       # static, fully unrolled (S small)
        g = gate_in[t] + jnp.dot(h, whh, preferred_element_type=jnp.float32)
        sg = jax.nn.sigmoid(g[:, 0:R6])      # one sigmoid: i|f|o, both dirs
        tg = jnp.tanh(g[:, R6:R8])           # one tanh: cell gate, both dirs
        c = sg[:, R2:R4] * c + sg[:, 0:R2] * tg
        h = sg[:, R4:R6] * jnp.tanh(c)
        outs_f[t] = h[:, 0:R]                # fwd output for time t
        outs_b[S - 1 - t] = h[:, R:R2]       # bwd output for time S-1-t
    return [jnp.concatenate([outs_f[t], outs_b[t]], axis=-1) for t in range(S)]


def make_model(vocab, S, Hb, R, C):
    """Builds (forward_fn, pack_params_fn) for the fused kernel."""
    G2 = 8 * R
    Vp = _r8(vocab)
    Fin = Hb + 2 * R
    assert 4 * Hb <= 128 and 3 * Hb <= 128 and G2 <= 128 and Fin <= 128 and C <= 128

    # ---- packed weight slab: each block 8-row aligned, zero-padded to 128 cols
    sizes = [('wemb', Vp), ('pemb', _r8(S)), ('wqkv', _r8(Hb)), ('wo', _r8(Hb)),
             ('w1', _r8(Hb)), ('w2', _r8(4 * Hb)), ('wih0', _r8(Hb)),
             ('whh0', _r8(2 * R)), ('wih1', _r8(2 * R)), ('whh1', _r8(2 * R)),
             ('wfc', _r8(Fin))]
    W_ROW, cur = {}, 0
    for name, n in sizes:
        W_ROW[name] = cur
        cur += n
    W_ROWS = cur                                   # 480 rows -> ~240 KiB

    # ---- packed bias / LN / gate-bias slab: one vector per 128-wide row
    V_ROW = {'b1': 0, 'b2': 1, 'ln1g': 2, 'ln1b': 3, 'ln2g': 4, 'ln2b': 5,
             'bg0': 6, 'bg1': 7, 'bfc': 8}
    V_ROWS = _r8(len(V_ROW))                       # (16, 128) -> 8 KiB

    # ------------------------------------------------------------------ kernel
    def kernel(ctx_ref, mask_ref, w_ref, v_ref, out_ref):
        B = mask_ref.shape[0]
        BS = B * S

        def wblk(name, nrows, ncols):
            r0 = W_ROW[name]
            return w_ref[r0:r0 + nrows, 0:ncols]

        def vrow(name, ncols):
            r0 = V_ROW[name]
            return v_ref[r0:r0 + 1, 0:ncols]

        # ---- embedding lookup: one-hot compare + single 2-D MXU matmul ----
        ids = ctx_ref[...]                                        # (BS, 1) int32
        onehot = (jax.lax.broadcasted_iota(jnp.int32, (BS, Vp), 1)
                  == ids).astype(jnp.float32)                     # (BS, Vp)
        x = jnp.dot(onehot, wblk('wemb', Vp, Hb),
                    preferred_element_type=jnp.float32)           # (BS, Hb)
        x = x + jnp.concatenate([wblk('pemb', S, Hb)] * B, axis=0)

        # ---- BERT-stub encoder layer (rows in (b, s) order) ----
        # TODO(synk): the real module loads a pretrained 12-layer multi-head
        # BERT from disk; a deterministic 1-layer single-head stub is used.
        qkv = jnp.dot(x, wblk('wqkv', Hb, 3 * Hb),
                      preferred_element_type=jnp.float32)         # (BS, 3Hb)
        q = qkv[:, 0:Hb].reshape(B, S, Hb)
        k = qkv[:, Hb:2 * Hb].reshape(B, S, Hb)
        v = qkv[:, 2 * Hb:3 * Hb].reshape(B, S, Hb)
        mask = mask_ref[...]                                      # (B, S)
        scores = jnp.einsum('bsd,btd->bst', q, k,
                            preferred_element_type=jnp.float32)
        # NOTE: a fully-masked row would give a uniform softmax (not hit here).
        scores = scores * (1.0 / float(Hb) ** 0.5) + (mask[:, None, :] - 1.0) * 1e9
        attn = jnp.einsum('bst,btd->bsd', jax.nn.softmax(scores, axis=-1), v,
                          preferred_element_type=jnp.float32).reshape(BS, Hb)
        attn = jnp.dot(attn, wblk('wo', Hb, Hb),
                       preferred_element_type=jnp.float32)
        h1 = _layer_norm(x + attn, vrow('ln1g', Hb), vrow('ln1b', Hb))
        # TODO(synk): BERT uses exact erf-GELU; tanh-approx GELU is used here.
        ffn = jax.nn.gelu(jnp.dot(h1, wblk('w1', Hb, 4 * Hb),
                                  preferred_element_type=jnp.float32)
                          + vrow('b1', 4 * Hb))
        ffn = jnp.dot(ffn, wblk('w2', 4 * Hb, Hb),
                      preferred_element_type=jnp.float32) + vrow('b2', Hb)
        enc = _layer_norm(h1 + ffn, vrow('ln2g', Hb), vrow('ln2b', Hb))  # (BS,Hb)

        # ---- bidirectional 2-layer LSTM ----
        # lane mask: gate column blocks alternate fwd/bwd every R lanes
        col = jax.lax.broadcasted_iota(jnp.int32, (1, G2), 1)
        is_fwd = (col % (2 * R)) < R                              # (1, G2)

        # layer 0: input projection hoisted into ONE (BS,Hb)@(Hb,8R) matmul
        gi0 = jnp.dot(enc, wblk('wih0', Hb, G2),
                      preferred_element_type=jnp.float32) + vrow('bg0', G2)
        gi0 = gi0.reshape(B, S, G2)
        g0 = [gi0[:, t, :] for t in range(S)]
        gate0 = [jnp.where(is_fwd, g0[t], g0[S - 1 - t]) for t in range(S)]
        step1 = _bilstm_recurrence(gate0, wblk('whh0', 2 * R, G2), B, R)

        # layer 1: stacked input projection (ONE matmul + one bias add)
        # TODO(synk): inter-layer LSTM dropout is an inference no-op; skipped.
        gi1 = jnp.dot(jnp.concatenate(step1, axis=0), wblk('wih1', 2 * R, G2),
                      preferred_element_type=jnp.float32) + vrow('bg1', G2)
        gi1 = gi1.reshape(S, B, G2)
        gate1 = [jnp.where(is_fwd, gi1[t], gi1[S - 1 - t]) for t in range(S)]
        step2 = _bilstm_recurrence(gate1, wblk('whh1', 2 * R, G2), B, R)

        # ---- cat([encoder, lstm]) -> ReLU -> max over seq -> fc ----
        p1 = jnp.max(jax.nn.relu(enc.reshape(B, S, Hb)), axis=1)          # (B,Hb)
        lstm_out = jnp.concatenate(step2, axis=0).reshape(S, B, 2 * R)
        p2 = jnp.max(jax.nn.relu(lstm_out), axis=0)                       # (B,2R)
        feat = jnp.concatenate([p1, p2], axis=-1)                         # (B,Fin)
        out_ref[...] = (jnp.dot(feat, wblk('wfc', Fin, C),
                                preferred_element_type=jnp.float32)
                        + vrow('bfc', C))

    # --------------------------------------------------------------- packing
    def pack_params(p):
        w = jnp.zeros((W_ROWS, 128), jnp.float32)
        v = jnp.zeros((V_ROWS, 128), jnp.float32)

        def wput(arr, name):
            nonlocal w
            r0 = W_ROW[name]
            w = w.at[r0:r0 + arr.shape[0], 0:arr.shape[1]].set(arr)

        def vput(vec, name):
            nonlocal v
            vec = vec.reshape(-1)
            v = v.at[V_ROW[name], 0:vec.shape[0]].set(vec)

        wput(p['word_emb'], 'wemb')
        wput(p['pos_emb'], 'pemb')
        bert = p['bert']
        wput(jnp.concatenate([bert['wq'], bert['wk'], bert['wv']], 1), 'wqkv')
        wput(bert['wo'], 'wo')
        wput(bert['w1'], 'w1')
        wput(bert['w2'], 'w2')
        for n in ('b1', 'b2', 'ln1g', 'ln1b', 'ln2g', 'ln2b'):
            vput(bert[n], n)

        def interleave(m_f, m_b):
            # PyTorch gate-stacked rows (i, f, g, o) -> right-multiply kernel
            # columns [i_f i_b | f_f f_b | o_f o_b | g_f g_b]
            blocks = []
            for g in (0, 1, 3, 2):                       # i, f, o, g
                blocks += [m_f[g * R:(g + 1) * R].T, m_b[g * R:(g + 1) * R].T]
            return jnp.concatenate(blocks, axis=1)

        for l, nih, nhh, nbg in ((0, 'wih0', 'whh0', 'bg0'),
                                 (1, 'wih1', 'whh1', 'bg1')):
            lf, lb = p['lstm'][l]
            wput(interleave(lf['w_ih'], lb['w_ih']), nih)            # (din, 8R)
            z = jnp.zeros_like(lf['w_hh'])
            wput(jnp.concatenate([interleave(lf['w_hh'], z),
                                  interleave(z, lb['w_hh'])], 0), nhh)  # (2R,8R)
            vput(interleave((lf['b_ih'] + lf['b_hh'])[:, None],
                            (lb['b_ih'] + lb['b_hh'])[:, None]), nbg)

        wput(p['fc']['w'].T, 'wfc')                                  # (Fin, C)
        vput(p['fc']['b'], 'bfc')
        return w, v

    # --------------------------------------------------------------- forward
    def forward(wslab, vslab, context, mask):
        B = context.shape[0]
        ctx = context.astype(jnp.int32).reshape(B * S, 1)
        return pl.pallas_call(
            kernel,
            out_shape=jax.ShapeDtypeStruct((B, C), jnp.float32),
            compiler_params=pltpu.CompilerParams(
                vmem_limit_bytes=32 * 1024 * 1024),
        )(ctx, mask.astype(jnp.float32), wslab, vslab)

    return forward, pack_params


# --------------------------------------------------------------------------
# Parameter initialization (deterministic, synthetic, PyTorch layouts)
# --------------------------------------------------------------------------
def init_params(key, vocab, S, Hb, R, L, C):
    keys = iter(jax.random.split(key, 64))
    nxt = lambda: next(keys)

    def u(shape, scale):
        return jax.random.uniform(nxt(), shape, jnp.float32, -scale, scale)

    p = {}
    p['word_emb'] = jax.random.normal(nxt(), (vocab, Hb), jnp.float32) * 0.02
    p['pos_emb'] = jax.random.normal(nxt(), (S, Hb), jnp.float32) * 0.02
    s = Hb ** -0.5
    p['bert'] = dict(
        wq=u((Hb, Hb), s), wk=u((Hb, Hb), s), wv=u((Hb, Hb), s), wo=u((Hb, Hb), s),
        w1=u((Hb, 4 * Hb), s), b1=jnp.zeros((4 * Hb,), jnp.float32),
        w2=u((4 * Hb, Hb), (4 * Hb) ** -0.5), b2=jnp.zeros((Hb,), jnp.float32),
        ln1g=jnp.ones((Hb,), jnp.float32), ln1b=jnp.zeros((Hb,), jnp.float32),
        ln2g=jnp.ones((Hb,), jnp.float32), ln2b=jnp.zeros((Hb,), jnp.float32))
    kR = 1.0 / float(R) ** 0.5
    G = 4 * R
    lstm = []
    for l in range(L):
        din = Hb if l == 0 else 2 * R
        dirs = []
        for _ in range(2):                     # fwd, bwd; PyTorch (i,f,g,o) rows
            dirs.append(dict(w_ih=u((G, din), kR), w_hh=u((G, R), kR),
                             b_ih=u((G,), kR), b_hh=u((G,), kR)))
        lstm.append(tuple(dirs))
    p['lstm'] = lstm
    fin = Hb + 2 * R
    kf = fin ** -0.5
    p['fc'] = dict(w=u((C, fin), kf), b=u((C,), kf))   # features: [encoder|lstm]
    return p


if __name__ == "__main__":
    # config (small, consistent with the module): hidden_size=32, rnn_hidden=16,
    # num_layers=2, pad_size=8, num_classes=3, vocab=50, batch=2
    B, S, Hb, R, L, C, vocab = 2, 8, 32, 16, 2, 3, 50

    key = jax.random.PRNGKey(0)
    kp, kc = jax.random.split(key)
    params = init_params(kp, vocab, S, Hb, R, L, C)

    forward, pack_params = make_model(vocab, S, Hb, R, C)
    wslab, vslab = pack_params(params)

    context = jax.random.randint(kc, (B, S), 0, vocab, dtype=jnp.int32)
    mask = jnp.ones((B, S), jnp.float32).at[1, 6:].set(0.0)  # pad tail of sample 1

    fwd = jax.jit(forward)
    out = fwd(wslab, vslab, context, mask)
    jax.block_until_ready(out)
    assert out.shape == (B, C) and out.dtype == jnp.float32
    print("KERNEL_OK")
</pallas_src>

<mosaic_0001>
module attributes {stable_mosaic.version = 11 : i64} {
  func.func @kernel(%arg0: memref<16x1xi32, #tpu.memory_space<vmem>>, %arg1: memref<2x8xf32, #tpu.memory_space<vmem>>, %arg2: memref<480x128xf32, #tpu.memory_space<vmem>>, %arg3: memref<16x128xf32, #tpu.memory_space<vmem>>, %arg4: memref<2x3xf32, #tpu.memory_space<vmem>>) attributes {dimension_semantics = [], scalar_prefetch = 0 : i64, scratch_operands = 0 : i64, tpu.core_type = #tpu.core_type<tc>} {
    %c0 = arith.constant 0 : index
    %c0_0 = arith.constant 0 : index
    %0 = vector.load %arg0[%c0, %c0_0] : memref<16x1xi32, #tpu.memory_space<vmem>>, vector<16x1xi32>
    %1 = tpu.iota {dimensions = array<i32: 1>} : vector<16x56xi32>
    %2 = vector.broadcast %0 : vector<16x1xi32> to vector<16x56xi32>
    %3 = arith.cmpi eq, %1, %2 : vector<16x56xi32>
    %4 = arith.extui %3 : vector<16x56xi1> to vector<16x56xi32>
    %5 = arith.sitofp %4 : vector<16x56xi32> to vector<16x56xf32>
    %c0_1 = arith.constant 0 : index
    %c0_2 = arith.constant 0 : index
    %6 = vector.load %arg2[%c0_1, %c0_2] : memref<480x128xf32, #tpu.memory_space<vmem>>, vector<56x32xf32>
    %cst = arith.constant dense<0.000000e+00> : vector<16x32xf32>
    %7 = tpu.matmul %5, %6, %cst {dimension_numbers = #tpu.dot_dimension_numbers<[1], [0], [0], [1], [0, 0, 1, 1], [], []>} : vector<16x56xf32>, vector<56x32xf32>, vector<16x32xf32> -> vector<16x32xf32>
    %c56 = arith.constant 56 : index
    %c0_3 = arith.constant 0 : index
    %8 = vector.load %arg2[%c56, %c0_3] : memref<480x128xf32, #tpu.memory_space<vmem>>, vector<8x32xf32>
    %9 = tpu.concatenate %8, %8 in 0 : vector<8x32xf32>, vector<8x32xf32> -> vector<16x32xf32>
    %10 = arith.addf %7, %9 : vector<16x32xf32>
    %c64 = arith.constant 64 : index
    %c0_4 = arith.constant 0 : index
    %11 = vector.load %arg2[%c64, %c0_4] : memref<480x128xf32, #tpu.memory_space<vmem>>, vector<32x96xf32>
    %cst_5 = arith.constant dense<0.000000e+00> : vector<16x96xf32>
    %12 = tpu.matmul %10, %11, %cst_5 {dimension_numbers = #tpu.dot_dimension_numbers<[1], [0], [0], [1], [0, 0, 1, 1], [], []>} : vector<16x32xf32>, vector<32x96xf32>, vector<16x96xf32> -> vector<16x96xf32>
    %13 = vector.extract_strided_slice %12 {offsets = [0, 0], sizes = [16, 32], strides = [1, 1]} : vector<16x96xf32> to vector<16x32xf32>
    %14 = vector.shape_cast %13 : vector<16x32xf32> to vector<2x8x32xf32>
    %15 = vector.extract_strided_slice %12 {offsets = [0, 32], sizes = [16, 32], strides = [1, 1]} : vector<16x96xf32> to vector<16x32xf32>
    %16 = vector.shape_cast %15 : vector<16x32xf32> to vector<2x8x32xf32>
    %17 = vector.extract_strided_slice %12 {offsets = [0, 64], sizes = [16, 32], strides = [1, 1]} : vector<16x96xf32> to vector<16x32xf32>
    %18 = vector.shape_cast %17 : vector<16x32xf32> to vector<2x8x32xf32>
    %c0_6 = arith.constant 0 : index
    %c0_7 = arith.constant 0 : index
    %19 = vector.load %arg1[%c0_6, %c0_7] : memref<2x8xf32, #tpu.memory_space<vmem>>, vector<2x8xf32>
    "tpu.trace_start"() <{level = 10 : i32, message = "bsd,btd->bst"}> : () -> ()
    %cst_8 = arith.constant dense<0.000000e+00> : vector<2x8x8xf32>
    %20 = tpu.matmul %14, %16, %cst_8 {dimension_numbers = #tpu.dot_dimension_numbers<[2], [2], [1], [1], [0, 0, 0, 1, 1, 1], [0], [0]>} : vector<2x8x32xf32>, vector<2x8x32xf32>, vector<2x8x8xf32> -> vector<2x8x8xf32>
    "tpu.trace_stop"() : () -> ()
    %cst_9 = arith.constant 0.176776692 : f32
    %21 = vector.broadcast %cst_9 : f32 to vector<2x8x8xf32>
    %22 = arith.mulf %20, %21 : vector<2x8x8xf32>
    %23 = vector.shape_cast %19 : vector<2x8xf32> to vector<2x1x8xf32>
    %cst_10 = arith.constant 1.000000e+00 : f32
    %24 = vector.broadcast %cst_10 : f32 to vector<2x1x8xf32>
    %25 = arith.subf %23, %24 : vector<2x1x8xf32>
    %cst_11 = arith.constant 1.000000e+09 : f32
    %26 = vector.broadcast %cst_11 : f32 to vector<2x1x8xf32>
    %27 = arith.mulf %25, %26 : vector<2x1x8xf32>
    %28 = vector.broadcast %27 : vector<2x1x8xf32> to vector<2x8x8xf32>
    %29 = arith.addf %22, %28 : vector<2x8x8xf32>
    %cst_12 = arith.constant dense<0xFF800000> : vector<2x8xf32>
    %30 = vector.multi_reduction <maximumf>, %29, %cst_12 [2] : vector<2x8x8xf32> to vector<2x8xf32>
    %cst_13 = arith.constant 0xFF800000 : f32
    %31 = vector.broadcast %cst_13 : f32 to vector<2x8xf32>
    %32 = arith.maximumf %31, %30 : vector<2x8xf32>
    %33 = vector.shape_cast %32 : vector<2x8xf32> to vector<2x8x1xf32>
    %34 = vector.broadcast %33 : vector<2x8x1xf32> to vector<2x8x8xf32>
    %35 = arith.subf %29, %34 : vector<2x8x8xf32>
    %36 = math.exp %35 : vector<2x8x8xf32>
    %cst_14 = arith.constant dense<0.000000e+00> : vector<2x8xf32>
    %37 = vector.multi_reduction <add>, %36, %cst_14 [2] : vector<2x8x8xf32> to vector<2x8xf32>
    %38 = vector.shape_cast %37 : vector<2x8xf32> to vector<2x8x1xf32>
    %39 = vector.broadcast %38 : vector<2x8x1xf32> to vector<2x8x8xf32>
    %40 = arith.divf %36, %39 : vector<2x8x8xf32>
    "tpu.trace_start"() <{level = 10 : i32, message = "bst,btd->bsd"}> : () -> ()
    %cst_15 = arith.constant dense<0.000000e+00> : vector<2x8x32xf32>
    %41 = tpu.matmul %40, %18, %cst_15 {dimension_numbers = #tpu.dot_dimension_numbers<[2], [1], [1], [2], [0, 0, 0, 1, 1, 2], [0], [0]>} : vector<2x8x8xf32>, vector<2x8x32xf32>, vector<2x8x32xf32> -> vector<2x8x32xf32>
    "tpu.trace_stop"() : () -> ()
    %42 = vector.shape_cast %41 : vector<2x8x32xf32> to vector<16x32xf32>
    %c96 = arith.constant 96 : index
    %c0_16 = arith.constant 0 : index
    %43 = vector.load %arg2[%c96, %c0_16] : memref<480x128xf32, #tpu.memory_space<vmem>>, vector<32x32xf32>
    %cst_17 = arith.constant dense<0.000000e+00> : vector<16x32xf32>
    %44 = tpu.matmul %42, %43, %cst_17 {dimension_numbers = #tpu.dot_dimension_numbers<[1], [0], [0], [1], [0, 0, 1, 1], [], []>} : vector<16x32xf32>, vector<32x32xf32>, vector<16x32xf32> -> vector<16x32xf32>
    %45 = arith.addf %10, %44 : vector<16x32xf32>
    %c2 = arith.constant 2 : index
    %c0_18 = arith.constant 0 : index
    %46 = vector.load %arg3[%c2, %c0_18] : memref<16x128xf32, #tpu.memory_space<vmem>>, vector<1x32xf32>
    %c3 = arith.constant 3 : index
    %c0_19 = arith.constant 0 : index
    %47 = vector.load %arg3[%c3, %c0_19] : memref<16x128xf32, #tpu.memory_space<vmem>>, vector<1x32xf32>
    %cst_20 = arith.constant dense<0.000000e+00> : vector<16xf32>
    %48 = vector.multi_reduction <add>, %45, %cst_20 [1] : vector<16x32xf32> to vector<16xf32>
    %49 = vector.shape_cast %48 : vector<16xf32> to vector<16x1xf32>
    %cst_21 = arith.constant 3.200000e+01 : f32
    %50 = vector.broadcast %cst_21 : f32 to vector<16x1xf32>
    %51 = arith.divf %49, %50 : vector<16x1xf32>
    %52 = vector.broadcast %51 : vector<16x1xf32> to vector<16x32xf32>
    %53 = arith.subf %45, %52 : vector<16x32xf32>
    %54 = arith.mulf %53, %53 : vector<16x32xf32>
    %cst_22 = arith.constant dense<0.000000e+00> : vector<16xf32>
    %55 = vector.multi_reduction <add>, %54, %cst_22 [1] : vector<16x32xf32> to vector<16xf32>
    %56 = vector.shape_cast %55 : vector<16xf32> to vector<16x1xf32>
    %cst_23 = arith.constant 3.200000e+01 : f32
    %57 = vector.broadcast %cst_23 : f32 to vector<16x1xf32>
    %58 = arith.divf %56, %57 : vector<16x1xf32>
    %59 = vector.broadcast %51 : vector<16x1xf32> to vector<16x32xf32>
    %60 = arith.subf %45, %59 : vector<16x32xf32>
    %cst_24 = arith.constant 9.99999996E-13 : f32
    %61 = vector.broadcast %cst_24 : f32 to vector<16x1xf32>
    %62 = arith.addf %58, %61 : vector<16x1xf32>
    %63 = math.rsqrt %62 : vector<16x1xf32>
    %64 = vector.broadcast %63 : vector<16x1xf32> to vector<16x32xf32>
    %65 = arith.mulf %60, %64 : vector<16x32xf32>
    %66 = vector.broadcast %46 : vector<1x32xf32> to vector<16x32xf32>
    %67 = arith.mulf %65, %66 : vector<16x32xf32>
    %68 = vector.broadcast %47 : vector<1x32xf32> to vector<16x32xf32>
    %69 = arith.addf %67, %68 : vector<16x32xf32>
    %c128 = arith.constant 128 : index
    %c0_25 = arith.constant 0 : index
    %70 = vector.load %arg2[%c128, %c0_25] : memref<480x128xf32, #tpu.memory_space<vmem>>, vector<32x128xf32>
    %cst_26 = arith.constant dense<0.000000e+00> : vector<16x128xf32>
    %71 = tpu.matmul %69, %70, %cst_26 {dimension_numbers = #tpu.dot_dimension_numbers<[1], [0], [0], [1], [0, 0, 1, 1], [], []>} : vector<16x32xf32>, vector<32x128xf32>, vector<16x128xf32> -> vector<16x128xf32>
    %c0_27 = arith.constant 0 : index
    %c0_28 = arith.constant 0 : index
    %72 = vector.load %arg3[%c0_27, %c0_28] : memref<16x128xf32, #tpu.memory_space<vmem>>, vector<1x128xf32>
    %73 = vector.broadcast %72 : vector<1x128xf32> to vector<16x128xf32>
    %74 = arith.addf %71, %73 : vector<16x128xf32>
    %75 = arith.mulf %74, %74 : vector<16x128xf32>
    %76 = arith.mulf %74, %75 : vector<16x128xf32>
    %cst_29 = arith.constant 4.471500e-02 : f32
    %77 = vector.broadcast %cst_29 : f32 to vector<16x128xf32>
    %78 = arith.mulf %77, %76 : vector<16x128xf32>
    %79 = arith.addf %74, %78 : vector<16x128xf32>
    %cst_30 = arith.constant 0.797884583 : f32
    %80 = vector.broadcast %cst_30 : f32 to vector<16x128xf32>
    %81 = arith.mulf %80, %79 : vector<16x128xf32>
    %82 = math.tanh %81 : vector<16x128xf32>
    %cst_31 = arith.constant 1.000000e+00 : f32
    %83 = vector.broadcast %cst_31 : f32 to vector<16x128xf32>
    %84 = arith.addf %83, %82 : vector<16x128xf32>
    %cst_32 = arith.constant 5.000000e-01 : f32
    %85 = vector.broadcast %cst_32 : f32 to vector<16x128xf32>
    %86 = arith.mulf %85, %84 : vector<16x128xf32>
    %87 = arith.mulf %74, %86 : vector<16x128xf32>
    %c160 = arith.constant 160 : index
    %c0_33 = arith.constant 0 : index
    %88 = vector.load %arg2[%c160, %c0_33] : memref<480x128xf32, #tpu.memory_space<vmem>>, vector<128x32xf32>
    %cst_34 = arith.constant dense<0.000000e+00> : vector<16x32xf32>
    %89 = tpu.matmul %87, %88, %cst_34 {dimension_numbers = #tpu.dot_dimension_numbers<[1], [0], [0], [1], [0, 0, 1, 1], [], []>} : vector<16x128xf32>, vector<128x32xf32>, vector<16x32xf32> -> vector<16x32xf32>
    %c1 = arith.constant 1 : index
    %c0_35 = arith.constant 0 : index
    %90 = vector.load %arg3[%c1, %c0_35] : memref<16x128xf32, #tpu.memory_space<vmem>>, vector<1x32xf32>
    %91 = vector.broadcast %90 : vector<1x32xf32> to vector<16x32xf32>
    %92 = arith.addf %89, %91 : vector<16x32xf32>
    %93 = arith.addf %69, %92 : vector<16x32xf32>
    %c4 = arith.constant 4 : index
    %c0_36 = arith.constant 0 : index
    %94 = vector.load %arg3[%c4, %c0_36] : memref<16x128xf32, #tpu.memory_space<vmem>>, vector<1x32xf32>
    %c5 = arith.constant 5 : index
    %c0_37 = arith.constant 0 : index
    %95 = vector.load %arg3[%c5, %c0_37] : memref<16x128xf32, #tpu.memory_space<vmem>>, vector<1x32xf32>
    %cst_38 = arith.constant dense<0.000000e+00> : vector<16xf32>
    %96 = vector.multi_reduction <add>, %93, %cst_38 [1] : vector<16x32xf32> to vector<16xf32>
    %97 = vector.shape_cast %96 : vector<16xf32> to vector<16x1xf32>
    %cst_39 = arith.constant 3.200000e+01 : f32
    %98 = vector.broadcast %cst_39 : f32 to vector<16x1xf32>
    %99 = arith.divf %97, %98 : vector<16x1xf32>
    %100 = vector.broadcast %99 : vector<16x1xf32> to vector<16x32xf32>
    %101 = arith.subf %93, %100 : vector<16x32xf32>
    %102 = arith.mulf %101, %101 : vector<16x32xf32>
    %cst_40 = arith.constant dense<0.000000e+00> : vector<16xf32>
    %103 = vector.multi_reduction <add>, %102, %cst_40 [1] : vector<16x32xf32> to vector<16xf32>
    %104 = vector.shape_cast %103 : vector<16xf32> to vector<16x1xf32>
    %cst_41 = arith.constant 3.200000e+01 : f32
    %105 = vector.broadcast %cst_41 : f32 to vector<16x1xf32>
    %106 = arith.divf %104, %105 : vector<16x1xf32>
    %107 = vector.broadcast %99 : vector<16x1xf32> to vector<16x32xf32>
    %108 = arith.subf %93, %107 : vector<16x32xf32>
    %cst_42 = arith.constant 9.99999996E-13 : f32
    %109 = vector.broadcast %cst_42 : f32 to vector<16x1xf32>
    %110 = arith.addf %106, %109 : vector<16x1xf32>
    %111 = math.rsqrt %110 : vector<16x1xf32>
    %112 = vector.broadcast %111 : vector<16x1xf32> to vector<16x32xf32>
    %113 = arith.mulf %108, %112 : vector<16x32xf32>
    %114 = vector.broadcast %94 : vector<1x32xf32> to vector<16x32xf32>
    %115 = arith.mulf %113, %114 : vector<16x32xf32>
    %116 = vector.broadcast %95 : vector<1x32xf32> to vector<16x32xf32>
    %117 = arith.addf %115, %116 : vector<16x32xf32>
    %118 = tpu.iota {dimensions = array<i32: 1>} : vector<1x128xi32>
    %c32_i32 = arith.constant 32 : i32
    %c0_i32 = arith.constant 0 : i32
    %119 = arith.cmpi eq, %c32_i32, %c0_i32 : i32
    %c1_i32 = arith.constant 1 : i32
    %120 = arith.select %119, %c1_i32, %c32_i32 : i32
    %121 = vector.broadcast %120 : i32 to vector<1x128xi32>
    %122 = arith.remsi %118, %121 : vector<1x128xi32>
    %c0_i32_43 = arith.constant 0 : i32
    %123 = vector.broadcast %c0_i32_43 : i32 to vector<1x128xi32>
    %124 = arith.cmpi ne, %122, %123 : vector<1x128xi32>
    %c0_i32_44 = arith.constant 0 : i32
    %125 = vector.broadcast %c0_i32_44 : i32 to vector<1x128xi32>
    %126 = arith.cmpi slt, %122, %125 : vector<1x128xi32>
    %c0_i32_45 = arith.constant 0 : i32
    %127 = arith.cmpi slt, %120, %c0_i32_45 : i32
    %128 = vector.broadcast %127 : i1 to vector<1x128xi1>
    %129 = vector.broadcast %128 : vector<1x128xi1> to vector<1x128xi1>
    %130 = arith.xori %126, %129 : vector<1x128xi1>
    %131 = arith.andi %130, %124 : vector<1x128xi1>
    %132 = vector.broadcast %120 : i32 to vector<1x128xi32>
    %133 = arith.addi %122, %132 : vector<1x128xi32>
    %134 = arith.select %131, %133, %122 : vector<1x128xi1>, vector<1x128xi32>
    %c16_i32 = arith.constant 16 : i32
    %135 = vector.broadcast %c16_i32 : i32 to vector<1x128xi32>
    %136 = arith.cmpi slt, %134, %135 : vector<1x128xi32>
    %c288 = arith.constant 288 : index
    %c0_46 = arith.constant 0 : index
    %137 = vector.load %arg2[%c288, %c0_46] : memref<480x128xf32, #tpu.memory_space<vmem>>, vector<32x128xf32>
    %cst_47 = arith.constant dense<0.000000e+00> : vector<16x128xf32>
    %138 = tpu.matmul %117, %137, %cst_47 {dimension_numbers = #tpu.dot_dimension_numbers<[1], [0], [0], [1], [0, 0, 1, 1], [], []>} : vector<16x32xf32>, vector<32x128xf32>, vector<16x128xf32> -> vector<16x128xf32>
    %c6 = arith.constant 6 : index
    %c0_48 = arith.constant 0 : index
    %139 = vector.load %arg3[%c6, %c0_48] : memref<16x128xf32, #tpu.memory_space<vmem>>, vector<1x128xf32>
    %140 = vector.broadcast %139 : vector<1x128xf32> to vector<16x128xf32>
    %141 = arith.addf %138, %140 : vector<16x128xf32>
    %142 = vector.shape_cast %141 : vector<16x128xf32> to vector<2x8x128xf32>
    %143 = vector.extract_strided_slice %142 {offsets = [0, 0, 0], sizes = [2, 1, 128], strides = [1, 1, 1]} : vector<2x8x128xf32> to vector<2x1x128xf32>
    %144 = vector.shape_cast %143 : vector<2x1x128xf32> to vector<2x128xf32>
    %145 = vector.extract_strided_slice %142 {offsets = [0, 1, 0], sizes = [2, 1, 128], strides = [1, 1, 1]} : vector<2x8x128xf32> to vector<2x1x128xf32>
    %146 = vector.shape_cast %145 : vector<2x1x128xf32> to vector<2x128xf32>
    %147 = vector.extract_strided_slice %142 {offsets = [0, 2, 0], sizes = [2, 1, 128], strides = [1, 1, 1]} : vector<2x8x128xf32> to vector<2x1x128xf32>
    %148 = vector.shape_cast %147 : vector<2x1x128xf32> to vector<2x128xf32>
    %149 = vector.extract_strided_slice %142 {offsets = [0, 3, 0], sizes = [2, 1, 128], strides = [1, 1, 1]} : vector<2x8x128xf32> to vector<2x1x128xf32>
    %150 = vector.shape_cast %149 : vector<2x1x128xf32> to vector<2x128xf32>
    %151 = vector.extract_strided_slice %142 {offsets = [0, 4, 0], sizes = [2, 1, 128], strides = [1, 1, 1]} : vector<2x8x128xf32> to vector<2x1x128xf32>
    %152 = vector.shape_cast %151 : vector<2x1x128xf32> to vector<2x128xf32>
    %153 = vector.extract_strided_slice %142 {offsets = [0, 5, 0], sizes = [2, 1, 128], strides = [1, 1, 1]} : vector<2x8x128xf32> to vector<2x1x128xf32>
    %154 = vector.shape_cast %153 : vector<2x1x128xf32> to vector<2x128xf32>
    %155 = vector.extract_strided_slice %142 {offsets = [0, 6, 0], sizes = [2, 1, 128], strides = [1, 1, 1]} : vector<2x8x128xf32> to vector<2x1x128xf32>
    %156 = vector.shape_cast %155 : vector<2x1x128xf32> to vector<2x128xf32>
    %157 = vector.extract_strided_slice %142 {offsets = [0, 7, 0], sizes = [2, 1, 128], strides = [1, 1, 1]} : vector<2x8x128xf32> to vector<2x1x128xf32>
    %158 = vector.shape_cast %157 : vector<2x1x128xf32> to vector<2x128xf32>
    %159 = vector.shape_cast %136 : vector<1x128xi1> to vector<1x128xi1>
    %160 = vector.broadcast %159 : vector<1x128xi1> to vector<2x128xi1>
    %161 = arith.select %160, %144, %158 : vector<2x128xi1>, vector<2x128xf32>
    %162 = vector.shape_cast %136 : vector<1x128xi1> to vector<1x128xi1>
    %163 = vector.broadcast %162 : vector<1x128xi1> to vector<2x128xi1>
    %164 = arith.select %163, %146, %156 : vector<2x128xi1>, vector<2x128xf32>
    %165 = vector.shape_cast %136 : vector<1x128xi1> to vector<1x128xi1>
    %166 = vector.broadcast %165 : vector<1x128xi1> to vector<2x128xi1>
    %167 = arith.select %166, %148, %154 : vector<2x128xi1>, vector<2x128xf32>
    %168 = vector.shape_cast %136 : vector<1x128xi1> to vector<1x128xi1>
    %169 = vector.broadcast %168 : vector<1x128xi1> to vector<2x128xi1>
    %170 = arith.select %169, %150, %152 : vector<2x128xi1>, vector<2x128xf32>
    %171 = vector.shape_cast %136 : vector<1x128xi1> to vector<1x128xi1>
    %172 = vector.broadcast %171 : vector<1x128xi1> to vector<2x128xi1>
    %173 = arith.select %172, %152, %150 : vector<2x128xi1>, vector<2x128xf32>
    %174 = vector.shape_cast %136 : vector<1x128xi1> to vector<1x128xi1>
    %175 = vector.broadcast %174 : vector<1x128xi1> to vector<2x128xi1>
    %176 = arith.select %175, %154, %148 : vector<2x128xi1>, vector<2x128xf32>
    %177 = vector.shape_cast %136 : vector<1x128xi1> to vector<1x128xi1>
    %178 = vector.broadcast %177 : vector<1x128xi1> to vector<2x128xi1>
    %179 = arith.select %178, %156, %146 : vector<2x128xi1>, vector<2x128xf32>
    %180 = vector.shape_cast %136 : vector<1x128xi1> to vector<1x128xi1>
    %181 = vector.broadcast %180 : vector<1x128xi1> to vector<2x128xi1>
    %182 = arith.select %181, %158, %144 : vector<2x128xi1>, vector<2x128xf32>
    %c320 = arith.constant 320 : index
    %c0_49 = arith.constant 0 : index
    %183 = vector.load %arg2[%c320, %c0_49] : memref<480x128xf32, #tpu.memory_space<vmem>>, vector<32x128xf32>
    %cst_50 = arith.constant 0.000000e+00 : f32
    %184 = vector.broadcast %cst_50 : f32 to vector<2x32xf32>
    %cst_51 = arith.constant 0.000000e+00 : f32
    %185 = vector.broadcast %cst_51 : f32 to vector<2x32xf32>
    %cst_52 = arith.constant dense<0.000000e+00> : vector<2x128xf32>
    %186 = tpu.matmul %184, %183, %cst_52 {dimension_numbers = #tpu.dot_dimension_numbers<[1], [0], [0], [1], [0, 0, 1, 1], [], []>} : vector<2x32xf32>, vector<32x128xf32>, vector<2x128xf32> -> vector<2x128xf32>
    %187 = arith.addf %161, %186 : vector<2x128xf32>
    %188 = vector.extract_strided_slice %187 {offsets = [0, 0], sizes = [2, 96], strides = [1, 1]} : vector<2x128xf32> to vector<2x96xf32>
    %189 = arith.negf %188 : vector<2x96xf32>
    %190 = math.exp %189 : vector<2x96xf32>
    %cst_53 = arith.constant 1.000000e+00 : f32
    %191 = vector.broadcast %cst_53 : f32 to vector<2x96xf32>
    %192 = arith.addf %191, %190 : vector<2x96xf32>
    %193 = arith.divf %191, %192 : vector<2x96xf32>
    %194 = vector.extract_strided_slice %187 {offsets = [0, 96], sizes = [2, 32], strides = [1, 1]} : vector<2x128xf32> to vector<2x32xf32>
    %195 = math.tanh %194 : vector<2x32xf32>
    %196 = vector.extract_strided_slice %193 {offsets = [0, 32], sizes = [2, 32], strides = [1, 1]} : vector<2x96xf32> to vector<2x32xf32>
    %197 = arith.mulf %196, %185 : vector<2x32xf32>
    %198 = vector.extract_strided_slice %193 {offsets = [0, 0], sizes = [2, 32], strides = [1, 1]} : vector<2x96xf32> to vector<2x32xf32>
    %199 = arith.mulf %198, %195 : vector<2x32xf32>
    %200 = arith.addf %197, %199 : vector<2x32xf32>
    %201 = vector.extract_strided_slice %193 {offsets = [0, 64], sizes = [2, 32], strides = [1, 1]} : vector<2x96xf32> to vector<2x32xf32>
    %202 = math.tanh %200 : vector<2x32xf32>
    %203 = arith.mulf %201, %202 : vector<2x32xf32>
    %204 = vector.extract_strided_slice %203 {offsets = [0, 0], sizes = [2, 16], strides = [1, 1]} : vector<2x32xf32> to vector<2x16xf32>
    %205 = vector.extract_strided_slice %203 {offsets = [0, 16], sizes = [2, 16], strides = [1, 1]} : vector<2x32xf32> to vector<2x16xf32>
    %cst_54 = arith.constant dense<0.000000e+00> : vector<2x128xf32>
    %206 = tpu.matmul %203, %183, %cst_54 {dimension_numbers = #tpu.dot_dimension_numbers<[1], [0], [0], [1], [0, 0, 1, 1], [], []>} : vector<2x32xf32>, vector<32x128xf32>, vector<2x128xf32> -> vector<2x128xf32>
    %207 = arith.addf %164, %206 : vector<2x128xf32>
    %208 = vector.extract_strided_slice %207 {offsets = [0, 0], sizes = [2, 96], strides = [1, 1]} : vector<2x128xf32> to vector<2x96xf32>
    %209 = arith.negf %208 : vector<2x96xf32>
    %210 = math.exp %209 : vector<2x96xf32>
    %cst_55 = arith.constant 1.000000e+00 : f32
    %211 = vector.broadcast %cst_55 : f32 to vector<2x96xf32>
    %212 = arith.addf %211, %210 : vector<2x96xf32>
    %213 = arith.divf %211, %212 : vector<2x96xf32>
    %214 = vector.extract_strided_slice %207 {offsets = [0, 96], sizes = [2, 32], strides = [1, 1]} : vector<2x128xf32> to vector<2x32xf32>
    %215 = math.tanh %214 : vector<2x32xf32>
    %216 = vector.extract_strided_slice %213 {offsets = [0, 32], sizes = [2, 32], strides = [1, 1]} : vector<2x96xf32> to vector<2x32xf32>
    %217 = arith.mulf %216, %200 : vector<2x32xf32>
    %218 = vector.extract_strided_slice %213 {offsets = [0, 0], sizes = [2, 32], strides = [1, 1]} : vector<2x96xf32> to vector<2x32xf32>
    %219 = arith.mulf %218, %215 : vector<2x32xf32>
    %220 = arith.addf %217, %219 : vector<2x32xf32>
    %221 = vector.extract_strided_slice %213 {offsets = [0, 64], sizes = [2, 32], strides = [1, 1]} : vector<2x96xf32> to vector<2x32xf32>
    %222 = math.tanh %220 : vector<2x32xf32>
    %223 = arith.mulf %221, %222 : vector<2x32xf32>
    %224 = vector.extract_strided_slice %223 {offsets = [0, 0], sizes = [2, 16], strides = [1, 1]} : vector<2x32xf32> to vector<2x16xf32>
    %225 = vector.extract_strided_slice %223 {offsets = [0, 16], sizes = [2, 16], strides = [1, 1]} : vector<2x32xf32> to vector<2x16xf32>
    %cst_56 = arith.constant dense<0.000000e+00> : vector<2x128xf32>
    %226 = tpu.matmul %223, %183, %cst_56 {dimension_numbers = #tpu.dot_dimension_numbers<[1], [0], [0], [1], [0, 0, 1, 1], [], []>} : vector<2x32xf32>, vector<32x128xf32>, vector<2x128xf32> -> vector<2x128xf32>
    %227 = arith.addf %167, %226 : vector<2x128xf32>
    %228 = vector.extract_strided_slice %227 {offsets = [0, 0], sizes = [2, 96], strides = [1, 1]} : vector<2x128xf32> to vector<2x96xf32>
    %229 = arith.negf %228 : vector<2x96xf32>
    %230 = math.exp %229 : vector<2x96xf32>
    %cst_57 = arith.constant 1.000000e+00 : f32
    %231 = vector.broadcast %cst_57 : f32 to vector<2x96xf32>
    %232 = arith.addf %231, %230 : vector<2x96xf32>
    %233 = arith.divf %231, %232 : vector<2x96xf32>
    %234 = vector.extract_strided_slice %227 {offsets = [0, 96], sizes = [2, 32], strides = [1, 1]} : vector<2x128xf32> to vector<2x32xf32>
    %235 = math.tanh %234 : vector<2x32xf32>
    %236 = vector.extract_strided_slice %233 {offsets = [0, 32], sizes = [2, 32], strides = [1, 1]} : vector<2x96xf32> to vector<2x32xf32>
    %237 = arith.mulf %236, %220 : vector<2x32xf32>
    %238 = vector.extract_strided_slice %233 {offsets = [0, 0], sizes = [2, 32], strides = [1, 1]} : vector<2x96xf32> to vector<2x32xf32>
    %239 = arith.mulf %238, %235 : vector<2x32xf32>
    %240 = arith.addf %237, %239 : vector<2x32xf32>
    %241 = vector.extract_strided_slice %233 {offsets = [0, 64], sizes = [2, 32], strides = [1, 1]} : vector<2x96xf32> to vector<2x32xf32>
    %242 = math.tanh %240 : vector<2x32xf32>
    %243 = arith.mulf %241, %242 : vector<2x32xf32>
    %244 = vector.extract_strided_slice %243 {offsets = [0, 0], sizes = [2, 16], strides = [1, 1]} : vector<2x32xf32> to vector<2x16xf32>
    %245 = vector.extract_strided_slice %243 {offsets = [0, 16], sizes = [2, 16], strides = [1, 1]} : vector<2x32xf32> to vector<2x16xf32>
    %cst_58 = arith.constant dense<0.000000e+00> : vector<2x128xf32>
    %246 = tpu.matmul %243, %183, %cst_58 {dimension_numbers = #tpu.dot_dimension_numbers<[1], [0], [0], [1], [0, 0, 1, 1], [], []>} : vector<2x32xf32>, vector<32x128xf32>, vector<2x128xf32> -> vector<2x128xf32>
    %247 = arith.addf %170, %246 : vector<2x128xf32>
    %248 = vector.extract_strided_slice %247 {offsets = [0, 0], sizes = [2, 96], strides = [1, 1]} : vector<2x128xf32> to vector<2x96xf32>
    %249 = arith.negf %248 : vector<2x96xf32>
    %250 = math.exp %249 : vector<2x96xf32>
    %cst_59 = arith.constant 1.000000e+00 : f32
    %251 = vector.broadcast %cst_59 : f32 to vector<2x96xf32>
    %252 = arith.addf %251, %250 : vector<2x96xf32>
    %253 = arith.divf %251, %252 : vector<2x96xf32>
    %254 = vector.extract_strided_slice %247 {offsets = [0, 96], sizes = [2, 32], strides = [1, 1]} : vector<2x128xf32> to vector<2x32xf32>
    %255 = math.tanh %254 : vector<2x32xf32>
    %256 = vector.extract_strided_slice %253 {offsets = [0, 32], sizes = [2, 32], strides = [1, 1]} : vector<2x96xf32> to vector<2x32xf32>
    %257 = arith.mulf %256, %240 : vector<2x32xf32>
    %258 = vector.extract_strided_slice %253 {offsets = [0, 0], sizes = [2, 32], strides = [1, 1]} : vector<2x96xf32> to vector<2x32xf32>
    %259 = arith.mulf %258, %255 : vector<2x32xf32>
    %260 = arith.addf %257, %259 : vector<2x32xf32>
    %261 = vector.extract_strided_slice %253 {offsets = [0, 64], sizes = [2, 32], strides = [1, 1]} : vector<2x96xf32> to vector<2x32xf32>
    %262 = math.tanh %260 : vector<2x32xf32>
    %263 = arith.mulf %261, %262 : vector<2x32xf32>
    %264 = vector.extract_strided_slice %263 {offsets = [0, 0], sizes = [2, 16], strides = [1, 1]} : vector<2x32xf32> to vector<2x16xf32>
    %265 = vector.extract_strided_slice %263 {offsets = [0, 16], sizes = [2, 16], strides = [1, 1]} : vector<2x32xf32> to vector<2x16xf32>
    %cst_60 = arith.constant dense<0.000000e+00> : vector<2x128xf32>
    %266 = tpu.matmul %263, %183, %cst_60 {dimension_numbers = #tpu.dot_dimension_numbers<[1], [0], [0], [1], [0, 0, 1, 1], [], []>} : vector<2x32xf32>, vector<32x128xf32>, vector<2x128xf32> -> vector<2x128xf32>
    %267 = arith.addf %173, %266 : vector<2x128xf32>
    %268 = vector.extract_strided_slice %267 {offsets = [0, 0], sizes = [2, 96], strides = [1, 1]} : vector<2x128xf32> to vector<2x96xf32>
    %269 = arith.negf %268 : vector<2x96xf32>
    %270 = math.exp %269 : vector<2x96xf32>
    %cst_61 = arith.constant 1.000000e+00 : f32
    %271 = vector.broadcast %cst_61 : f32 to vector<2x96xf32>
    %272 = arith.addf %271, %270 : vector<2x96xf32>
    %273 = arith.divf %271, %272 : vector<2x96xf32>
    %274 = vector.extract_strided_slice %267 {offsets = [0, 96], sizes = [2, 32], strides = [1, 1]} : vector<2x128xf32> to vector<2x32xf32>
    %275 = math.tanh %274 : vector<2x32xf32>
    %276 = vector.extract_strided_slice %273 {offsets = [0, 32], sizes = [2, 32], strides = [1, 1]} : vector<2x96xf32> to vector<2x32xf32>
    %277 = arith.mulf %276, %260 : vector<2x32xf32>
    %278 = vector.extract_strided_slice %273 {offsets = [0, 0], sizes = [2, 32], strides = [1, 1]} : vector<2x96xf32> to vector<2x32xf32>
    %279 = arith.mulf %278, %275 : vector<2x32xf32>
    %280 = arith.addf %277, %279 : vector<2x32xf32>
    %281 = vector.extract_strided_slice %273 {offsets = [0, 64], sizes = [2, 32], strides = [1, 1]} : vector<2x96xf32> to vector<2x32xf32>
    %282 = math.tanh %280 : vector<2x32xf32>
    %283 = arith.mulf %281, %282 : vector<2x32xf32>
    %284 = vector.extract_strided_slice %283 {offsets = [0, 0], sizes = [2, 16], strides = [1, 1]} : vector<2x32xf32> to vector<2x16xf32>
    %285 = vector.extract_strided_slice %283 {offsets = [0, 16], sizes = [2, 16], strides = [1, 1]} : vector<2x32xf32> to vector<2x16xf32>
    %cst_62 = arith.constant dense<0.000000e+00> : vector<2x128xf32>
    %286 = tpu.matmul %283, %183, %cst_62 {dimension_numbers = #tpu.dot_dimension_numbers<[1], [0], [0], [1], [0, 0, 1, 1], [], []>} : vector<2x32xf32>, vector<32x128xf32>, vector<2x128xf32> -> vector<2x128xf32>
    %287 = arith.addf %176, %286 : vector<2x128xf32>
    %288 = vector.extract_strided_slice %287 {offsets = [0, 0], sizes = [2, 96], strides = [1, 1]} : vector<2x128xf32> to vector<2x96xf32>
    %289 = arith.negf %288 : vector<2x96xf32>
    %290 = math.exp %289 : vector<2x96xf32>
    %cst_63 = arith.constant 1.000000e+00 : f32
    %291 = vector.broadcast %cst_63 : f32 to vector<2x96xf32>
    %292 = arith.addf %291, %290 : vector<2x96xf32>
    %293 = arith.divf %291, %292 : vector<2x96xf32>
    %294 = vector.extract_strided_slice %287 {offsets = [0, 96], sizes = [2, 32], strides = [1, 1]} : vector<2x128xf32> to vector<2x32xf32>
    %295 = math.tanh %294 : vector<2x32xf32>
    %296 = vector.extract_strided_slice %293 {offsets = [0, 32], sizes = [2, 32], strides = [1, 1]} : vector<2x96xf32> to vector<2x32xf32>
    %297 = arith.mulf %296, %280 : vector<2x32xf32>
    %298 = vector.extract_strided_slice %293 {offsets = [0, 0], sizes = [2, 32], strides = [1, 1]} : vector<2x96xf32> to vector<2x32xf32>
    %299 = arith.mulf %298, %295 : vector<2x32xf32>
    %300 = arith.addf %297, %299 : vector<2x32xf32>
    %301 = vector.extract_strided_slice %293 {offsets = [0, 64], sizes = [2, 32], strides = [1, 1]} : vector<2x96xf32> to vector<2x32xf32>
    %302 = math.tanh %300 : vector<2x32xf32>
    %303 = arith.mulf %301, %302 : vector<2x32xf32>
    %304 = vector.extract_strided_slice %303 {offsets = [0, 0], sizes = [2, 16], strides = [1, 1]} : vector<2x32xf32> to vector<2x16xf32>
    %305 = vector.extract_strided_slice %303 {offsets = [0, 16], sizes = [2, 16], strides = [1, 1]} : vector<2x32xf32> to vector<2x16xf32>
    %cst_64 = arith.constant dense<0.000000e+00> : vector<2x128xf32>
    %306 = tpu.matmul %303, %183, %cst_64 {dimension_numbers = #tpu.dot_dimension_numbers<[1], [0], [0], [1], [0, 0, 1, 1], [], []>} : vector<2x32xf32>, vector<32x128xf32>, vector<2x128xf32> -> vector<2x128xf32>
    %307 = arith.addf %179, %306 : vector<2x128xf32>
    %308 = vector.extract_strided_slice %307 {offsets = [0, 0], sizes = [2, 96], strides = [1, 1]} : vector<2x128xf32> to vector<2x96xf32>
    %309 = arith.negf %308 : vector<2x96xf32>
    %310 = math.exp %309 : vector<2x96xf32>
    %cst_65 = arith.constant 1.000000e+00 : f32
    %311 = vector.broadcast %cst_65 : f32 to vector<2x96xf32>
    %312 = arith.addf %311, %310 : vector<2x96xf32>
    %313 = arith.divf %311, %312 : vector<2x96xf32>
    %314 = vector.extract_strided_slice %307 {offsets = [0, 96], sizes = [2, 32], strides = [1, 1]} : vector<2x128xf32> to vector<2x32xf32>
    %315 = math.tanh %314 : vector<2x32xf32>
    %316 = vector.extract_strided_slice %313 {offsets = [0, 32], sizes = [2, 32], strides = [1, 1]} : vector<2x96xf32> to vector<2x32xf32>
    %317 = arith.mulf %316, %300 : vector<2x32xf32>
    %318 = vector.extract_strided_slice %313 {offsets = [0, 0], sizes = [2, 32], strides = [1, 1]} : vector<2x96xf32> to vector<2x32xf32>
    %319 = arith.mulf %318, %315 : vector<2x32xf32>
    %320 = arith.addf %317, %319 : vector<2x32xf32>
    %321 = vector.extract_strided_slice %313 {offsets = [0, 64], sizes = [2, 32], strides = [1, 1]} : vector<2x96xf32> to vector<2x32xf32>
    %322 = math.tanh %320 : vector<2x32xf32>
    %323 = arith.mulf %321, %322 : vector<2x32xf32>
    %324 = vector.extract_strided_slice %323 {offsets = [0, 0], sizes = [2, 16], strides = [1, 1]} : vector<2x32xf32> to vector<2x16xf32>
    %325 = vector.extract_strided_slice %323 {offsets = [0, 16], sizes = [2, 16], strides = [1, 1]} : vector<2x32xf32> to vector<2x16xf32>
    %cst_66 = arith.constant dense<0.000000e+00> : vector<2x128xf32>
    %326 = tpu.matmul %323, %183, %cst_66 {dimension_numbers = #tpu.dot_dimension_numbers<[1], [0], [0], [1], [0, 0, 1, 1], [], []>} : vector<2x32xf32>, vector<32x128xf32>, vector<2x128xf32> -> vector<2x128xf32>
    %327 = arith.addf %182, %326 : vector<2x128xf32>
    %328 = vector.extract_strided_slice %327 {offsets = [0, 0], sizes = [2, 96], strides = [1, 1]} : vector<2x128xf32> to vector<2x96xf32>
    %329 = arith.negf %328 : vector<2x96xf32>
    %330 = math.exp %329 : vector<2x96xf32>
    %cst_67 = arith.constant 1.000000e+00 : f32
    %331 = vector.broadcast %cst_67 : f32 to vector<2x96xf32>
    %332 = arith.addf %331, %330 : vector<2x96xf32>
    %333 = arith.divf %331, %332 : vector<2x96xf32>
    %334 = vector.extract_strided_slice %327 {offsets = [0, 96], sizes = [2, 32], strides = [1, 1]} : vector<2x128xf32> to vector<2x32xf32>
    %335 = math.tanh %334 : vector<2x32xf32>
    %336 = vector.extract_strided_slice %333 {offsets = [0, 32], sizes = [2, 32], strides = [1, 1]} : vector<2x96xf32> to vector<2x32xf32>
    %337 = arith.mulf %336, %320 : vector<2x32xf32>
    %338 = vector.extract_strided_slice %333 {offsets = [0, 0], sizes = [2, 32], strides = [1, 1]} : vector<2x96xf32> to vector<2x32xf32>
    %339 = arith.mulf %338, %335 : vector<2x32xf32>
    %340 = arith.addf %337, %339 : vector<2x32xf32>
    %341 = vector.extract_strided_slice %333 {offsets = [0, 64], sizes = [2, 32], strides = [1, 1]} : vector<2x96xf32> to vector<2x32xf32>
    %342 = math.tanh %340 : vector<2x32xf32>
    %343 = arith.mulf %341, %342 : vector<2x32xf32>
    %344 = vector.extract_strided_slice %343 {offsets = [0, 0], sizes = [2, 16], strides = [1, 1]} : vector<2x32xf32> to vector<2x16xf32>
    %345 = vector.extract_strided_slice %343 {offsets = [0, 16], sizes = [2, 16], strides = [1, 1]} : vector<2x32xf32> to vector<2x16xf32>
    %346 = tpu.concatenate %204, %345 in 1 : vector<2x16xf32>, vector<2x16xf32> -> vector<2x32xf32>
    %347 = tpu.concatenate %224, %325 in 1 : vector<2x16xf32>, vector<2x16xf32> -> vector<2x32xf32>
    %348 = tpu.concatenate %244, %305 in 1 : vector<2x16xf32>, vector<2x16xf32> -> vector<2x32xf32>
    %349 = tpu.concatenate %264, %285 in 1 : vector<2x16xf32>, vector<2x16xf32> -> vector<2x32xf32>
    %350 = tpu.concatenate %284, %265 in 1 : vector<2x16xf32>, vector<2x16xf32> -> vector<2x32xf32>
    %351 = tpu.concatenate %304, %245 in 1 : vector<2x16xf32>, vector<2x16xf32> -> vector<2x32xf32>
    %352 = tpu.concatenate %324, %225 in 1 : vector<2x16xf32>, vector<2x16xf32> -> vector<2x32xf32>
    %353 = tpu.concatenate %344, %205 in 1 : vector<2x16xf32>, vector<2x16xf32> -> vector<2x32xf32>
    %354 = tpu.concatenate %346, %347, %348, %349, %350, %351, %352, %353 in 0 : vector<2x32xf32>, vector<2x32xf32>, vector<2x32xf32>, vector<2x32xf32>, vector<2x32xf32>, vector<2x32xf32>, vector<2x32xf32>, vector<2x32xf32> -> vector<16x32xf32>
    %c352 = arith.constant 352 : index
    %c0_68 = arith.constant 0 : index
    %355 = vector.load %arg2[%c352, %c0_68] : memref<480x128xf32, #tpu.memory_space<vmem>>, vector<32x128xf32>
    %cst_69 = arith.constant dense<0.000000e+00> : vector<16x128xf32>
    %356 = tpu.matmul %354, %355, %cst_69 {dimension_numbers = #tpu.dot_dimension_numbers<[1], [0], [0], [1], [0, 0, 1, 1], [], []>} : vector<16x32xf32>, vector<32x128xf32>, vector<16x128xf32> -> vector<16x128xf32>
    %c7 = arith.constant 7 : index
    %c0_70 = arith.constant 0 : index
    %357 = vector.load %arg3[%c7, %c0_70] : memref<16x128xf32, #tpu.memory_space<vmem>>, vector<1x128xf32>
    %358 = vector.broadcast %357 : vector<1x128xf32> to vector<16x128xf32>
    %359 = arith.addf %356, %358 : vector<16x128xf32>
    %360 = vector.shape_cast %359 : vector<16x128xf32> to vector<8x2x128xf32>
    %361 = vector.extract_strided_slice %360 {offsets = [0, 0, 0], sizes = [1, 2, 128], strides = [1, 1, 1]} : vector<8x2x128xf32> to vector<1x2x128xf32>
    %362 = vector.shape_cast %361 : vector<1x2x128xf32> to vector<2x128xf32>
    %363 = vector.extract_strided_slice %360 {offsets = [7, 0, 0], sizes = [1, 2, 128], strides = [1, 1, 1]} : vector<8x2x128xf32> to vector<1x2x128xf32>
    %364 = vector.shape_cast %363 : vector<1x2x128xf32> to vector<2x128xf32>
    %365 = vector.shape_cast %136 : vector<1x128xi1> to vector<1x128xi1>
    %366 = vector.broadcast %365 : vector<1x128xi1> to vector<2x128xi1>
    %367 = arith.select %366, %362, %364 : vector<2x128xi1>, vector<2x128xf32>
    %368 = vector.extract_strided_slice %360 {offsets = [1, 0, 0], sizes = [1, 2, 128], strides = [1, 1, 1]} : vector<8x2x128xf32> to vector<1x2x128xf32>
    %369 = vector.shape_cast %368 : vector<1x2x128xf32> to vector<2x128xf32>
    %370 = vector.extract_strided_slice %360 {offsets = [6, 0, 0], sizes = [1, 2, 128], strides = [1, 1, 1]} : vector<8x2x128xf32> to vector<1x2x128xf32>
    %371 = vector.shape_cast %370 : vector<1x2x128xf32> to vector<2x128xf32>
    %372 = vector.shape_cast %136 : vector<1x128xi1> to vector<1x128xi1>
    %373 = vector.broadcast %372 : vector<1x128xi1> to vector<2x128xi1>
    %374 = arith.select %373, %369, %371 : vector<2x128xi1>, vector<2x128xf32>
    %375 = vector.extract_strided_slice %360 {offsets = [2, 0, 0], sizes = [1, 2, 128], strides = [1, 1, 1]} : vector<8x2x128xf32> to vector<1x2x128xf32>
    %376 = vector.shape_cast %375 : vector<1x2x128xf32> to vector<2x128xf32>
    %377 = vector.extract_strided_slice %360 {offsets = [5, 0, 0], sizes = [1, 2, 128], strides = [1, 1, 1]} : vector<8x2x128xf32> to vector<1x2x128xf32>
    %378 = vector.shape_cast %377 : vector<1x2x128xf32> to vector<2x128xf32>
    %379 = vector.shape_cast %136 : vector<1x128xi1> to vector<1x128xi1>
    %380 = vector.broadcast %379 : vector<1x128xi1> to vector<2x128xi1>
    %381 = arith.select %380, %376, %378 : vector<2x128xi1>, vector<2x128xf32>
    %382 = vector.extract_strided_slice %360 {offsets = [3, 0, 0], sizes = [1, 2, 128], strides = [1, 1, 1]} : vector<8x2x128xf32> to vector<1x2x128xf32>
    %383 = vector.shape_cast %382 : vector<1x2x128xf32> to vector<2x128xf32>
    %384 = vector.extract_strided_slice %360 {offsets = [4, 0, 0], sizes = [1, 2, 128], strides = [1, 1, 1]} : vector<8x2x128xf32> to vector<1x2x128xf32>
    %385 = vector.shape_cast %384 : vector<1x2x128xf32> to vector<2x128xf32>
    %386 = vector.shape_cast %136 : vector<1x128xi1> to vector<1x128xi1>
    %387 = vector.broadcast %386 : vector<1x128xi1> to vector<2x128xi1>
    %388 = arith.select %387, %383, %385 : vector<2x128xi1>, vector<2x128xf32>
    %389 = vector.extract_strided_slice %360 {offsets = [4, 0, 0], sizes = [1, 2, 128], strides = [1, 1, 1]} : vector<8x2x128xf32> to vector<1x2x128xf32>
    %390 = vector.shape_cast %389 : vector<1x2x128xf32> to vector<2x128xf32>
    %391 = vector.extract_strided_slice %360 {offsets = [3, 0, 0], sizes = [1, 2, 128], strides = [1, 1, 1]} : vector<8x2x128xf32> to vector<1x2x128xf32>
    %392 = vector.shape_cast %391 : vector<1x2x128xf32> to vector<2x128xf32>
    %393 = vector.shape_cast %136 : vector<1x128xi1> to vector<1x128xi1>
    %394 = vector.broadcast %393 : vector<1x128xi1> to vector<2x128xi1>
    %395 = arith.select %394, %390, %392 : vector<2x128xi1>, vector<2x128xf32>
    %396 = vector.extract_strided_slice %360 {offsets = [5, 0, 0], sizes = [1, 2, 128], strides = [1, 1, 1]} : vector<8x2x128xf32> to vector<1x2x128xf32>
    %397 = vector.shape_cast %396 : vector<1x2x128xf32> to vector<2x128xf32>
    %398 = vector.extract_strided_slice %360 {offsets = [2, 0, 0], sizes = [1, 2, 128], strides = [1, 1, 1]} : vector<8x2x128xf32> to vector<1x2x128xf32>
    %399 = vector.shape_cast %398 : vector<1x2x128xf32> to vector<2x128xf32>
    %400 = vector.shape_cast %136 : vector<1x128xi1> to vector<1x128xi1>
    %401 = vector.broadcast %400 : vector<1x128xi1> to vector<2x128xi1>
    %402 = arith.select %401, %397, %399 : vector<2x128xi1>, vector<2x128xf32>
    %403 = vector.extract_strided_slice %360 {offsets = [6, 0, 0], sizes = [1, 2, 128], strides = [1, 1, 1]} : vector<8x2x128xf32> to vector<1x2x128xf32>
    %404 = vector.shape_cast %403 : vector<1x2x128xf32> to vector<2x128xf32>
    %405 = vector.extract_strided_slice %360 {offsets = [1, 0, 0], sizes = [1, 2, 128], strides = [1, 1, 1]} : vector<8x2x128xf32> to vector<1x2x128xf32>
    %406 = vector.shape_cast %405 : vector<1x2x128xf32> to vector<2x128xf32>
    %407 = vector.shape_cast %136 : vector<1x128xi1> to vector<1x128xi1>
    %408 = vector.broadcast %407 : vector<1x128xi1> to vector<2x128xi1>
    %409 = arith.select %408, %404, %406 : vector<2x128xi1>, vector<2x128xf32>
    %410 = vector.extract_strided_slice %360 {offsets = [7, 0, 0], sizes = [1, 2, 128], strides = [1, 1, 1]} : vector<8x2x128xf32> to vector<1x2x128xf32>
    %411 = vector.shape_cast %410 : vector<1x2x128xf32> to vector<2x128xf32>
    %412 = vector.extract_strided_slice %360 {offsets = [0, 0, 0], sizes = [1, 2, 128], strides = [1, 1, 1]} : vector<8x2x128xf32> to vector<1x2x128xf32>
    %413 = vector.shape_cast %412 : vector<1x2x128xf32> to vector<2x128xf32>
    %414 = vector.shape_cast %136 : vector<1x128xi1> to vector<1x128xi1>
    %415 = vector.broadcast %414 : vector<1x128xi1> to vector<2x128xi1>
    %416 = arith.select %415, %411, %413 : vector<2x128xi1>, vector<2x128xf32>
    %c384 = arith.constant 384 : index
    %c0_71 = arith.constant 0 : index
    %417 = vector.load %arg2[%c384, %c0_71] : memref<480x128xf32, #tpu.memory_space<vmem>>, vector<32x128xf32>
    %cst_72 = arith.constant 0.000000e+00 : f32
    %418 = vector.broadcast %cst_72 : f32 to vector<2x32xf32>
    %cst_73 = arith.constant 0.000000e+00 : f32
    %419 = vector.broadcast %cst_73 : f32 to vector<2x32xf32>
    %cst_74 = arith.constant dense<0.000000e+00> : vector<2x128xf32>
    %420 = tpu.matmul %418, %417, %cst_74 {dimension_numbers = #tpu.dot_dimension_numbers<[1], [0], [0], [1], [0, 0, 1, 1], [], []>} : vector<2x32xf32>, vector<32x128xf32>, vector<2x128xf32> -> vector<2x128xf32>
    %421 = arith.addf %367, %420 : vector<2x128xf32>
    %422 = vector.extract_strided_slice %421 {offsets = [0, 0], sizes = [2, 96], strides = [1, 1]} : vector<2x128xf32> to vector<2x96xf32>
    %423 = arith.negf %422 : vector<2x96xf32>
    %424 = math.exp %423 : vector<2x96xf32>
    %cst_75 = arith.constant 1.000000e+00 : f32
    %425 = vector.broadcast %cst_75 : f32 to vector<2x96xf32>
    %426 = arith.addf %425, %424 : vector<2x96xf32>
    %427 = arith.divf %425, %426 : vector<2x96xf32>
    %428 = vector.extract_strided_slice %421 {offsets = [0, 96], sizes = [2, 32], strides = [1, 1]} : vector<2x128xf32> to vector<2x32xf32>
    %429 = math.tanh %428 : vector<2x32xf32>
    %430 = vector.extract_strided_slice %427 {offsets = [0, 32], sizes = [2, 32], strides = [1, 1]} : vector<2x96xf32> to vector<2x32xf32>
    %431 = arith.mulf %430, %419 : vector<2x32xf32>
    %432 = vector.extract_strided_slice %427 {offsets = [0, 0], sizes = [2, 32], strides = [1, 1]} : vector<2x96xf32> to vector<2x32xf32>
    %433 = arith.mulf %432, %429 : vector<2x32xf32>
    %434 = arith.addf %431, %433 : vector<2x32xf32>
    %435 = vector.extract_strided_slice %427 {offsets = [0, 64], sizes = [2, 32], strides = [1, 1]} : vector<2x96xf32> to vector<2x32xf32>
    %436 = math.tanh %434 : vector<2x32xf32>
    %437 = arith.mulf %435, %436 : vector<2x32xf32>
    %438 = vector.extract_strided_slice %437 {offsets = [0, 0], sizes = [2, 16], strides = [1, 1]} : vector<2x32xf32> to vector<2x16xf32>
    %439 = vector.extract_strided_slice %437 {offsets = [0, 16], sizes = [2, 16], strides = [1, 1]} : vector<2x32xf32> to vector<2x16xf32>
    %cst_76 = arith.constant dense<0.000000e+00> : vector<2x128xf32>
    %440 = tpu.matmul %437, %417, %cst_76 {dimension_numbers = #tpu.dot_dimension_numbers<[1], [0], [0], [1], [0, 0, 1, 1], [], []>} : vector<2x32xf32>, vector<32x128xf32>, vector<2x128xf32> -> vector<2x128xf32>
    %441 = arith.addf %374, %440 : vector<2x128xf32>
    %442 = vector.extract_strided_slice %441 {offsets = [0, 0], sizes = [2, 96], strides = [1, 1]} : vector<2x128xf32> to vector<2x96xf32>
    %443 = arith.negf %442 : vector<2x96xf32>
    %444 = math.exp %443 : vector<2x96xf32>
    %cst_77 = arith.constant 1.000000e+00 : f32
    %445 = vector.broadcast %cst_77 : f32 to vector<2x96xf32>
    %446 = arith.addf %445, %444 : vector<2x96xf32>
    %447 = arith.divf %445, %446 : vector<2x96xf32>
    %448 = vector.extract_strided_slice %441 {offsets = [0, 96], sizes = [2, 32], strides = [1, 1]} : vector<2x128xf32> to vector<2x32xf32>
    %449 = math.tanh %448 : vector<2x32xf32>
    %450 = vector.extract_strided_slice %447 {offsets = [0, 32], sizes = [2, 32], strides = [1, 1]} : vector<2x96xf32> to vector<2x32xf32>
    %451 = arith.mulf %450, %434 : vector<2x32xf32>
    %452 = vector.extract_strided_slice %447 {offsets = [0, 0], sizes = [2, 32], strides = [1, 1]} : vector<2x96xf32> to vector<2x32xf32>
    %453 = arith.mulf %452, %449 : vector<2x32xf32>
    %454 = arith.addf %451, %453 : vector<2x32xf32>
    %455 = vector.extract_strided_slice %447 {offsets = [0, 64], sizes = [2, 32], strides = [1, 1]} : vector<2x96xf32> to vector<2x32xf32>
    %456 = math.tanh %454 : vector<2x32xf32>
    %457 = arith.mulf %455, %456 : vector<2x32xf32>
    %458 = vector.extract_strided_slice %457 {offsets = [0, 0], sizes = [2, 16], strides = [1, 1]} : vector<2x32xf32> to vector<2x16xf32>
    %459 = vector.extract_strided_slice %457 {offsets = [0, 16], sizes = [2, 16], strides = [1, 1]} : vector<2x32xf32> to vector<2x16xf32>
    %cst_78 = arith.constant dense<0.000000e+00> : vector<2x128xf32>
    %460 = tpu.matmul %457, %417, %cst_78 {dimension_numbers = #tpu.dot_dimension_numbers<[1], [0], [0], [1], [0, 0, 1, 1], [], []>} : vector<2x32xf32>, vector<32x128xf32>, vector<2x128xf32> -> vector<2x128xf32>
    %461 = arith.addf %381, %460 : vector<2x128xf32>
    %462 = vector.extract_strided_slice %461 {offsets = [0, 0], sizes = [2, 96], strides = [1, 1]} : vector<2x128xf32> to vector<2x96xf32>
    %463 = arith.negf %462 : vector<2x96xf32>
    %464 = math.exp %463 : vector<2x96xf32>
    %cst_79 = arith.constant 1.000000e+00 : f32
    %465 = vector.broadcast %cst_79 : f32 to vector<2x96xf32>
    %466 = arith.addf %465, %464 : vector<2x96xf32>
    %467 = arith.divf %465, %466 : vector<2x96xf32>
    %468 = vector.extract_strided_slice %461 {offsets = [0, 96], sizes = [2, 32], strides = [1, 1]} : vector<2x128xf32> to vector<2x32xf32>
    %469 = math.tanh %468 : vector<2x32xf32>
    %470 = vector.extract_strided_slice %467 {offsets = [0, 32], sizes = [2, 32], strides = [1, 1]} : vector<2x96xf32> to vector<2x32xf32>
    %471 = arith.mulf %470, %454 : vector<2x32xf32>
    %472 = vector.extract_strided_slice %467 {offsets = [0, 0], sizes = [2, 32], strides = [1, 1]} : vector<2x96xf32> to vector<2x32xf32>
    %473 = arith.mulf %472, %469 : vector<2x32xf32>
    %474 = arith.addf %471, %473 : vector<2x32xf32>
    %475 = vector.extract_strided_slice %467 {offsets = [0, 64], sizes = [2, 32], strides = [1, 1]} : vector<2x96xf32> to vector<2x32xf32>
    %476 = math.tanh %474 : vector<2x32xf32>
    %477 = arith.mulf %475, %476 : vector<2x32xf32>
    %478 = vector.extract_strided_slice %477 {offsets = [0, 0], sizes = [2, 16], strides = [1, 1]} : vector<2x32xf32> to vector<2x16xf32>
    %479 = vector.extract_strided_slice %477 {offsets = [0, 16], sizes = [2, 16], strides = [1, 1]} : vector<2x32xf32> to vector<2x16xf32>
    %cst_80 = arith.constant dense<0.000000e+00> : vector<2x128xf32>
    %480 = tpu.matmul %477, %417, %cst_80 {dimension_numbers = #tpu.dot_dimension_numbers<[1], [0], [0], [1], [0, 0, 1, 1], [], []>} : vector<2x32xf32>, vector<32x128xf32>, vector<2x128xf32> -> vector<2x128xf32>
    %481 = arith.addf %388, %480 : vector<2x128xf32>
    %482 = vector.extract_strided_slice %481 {offsets = [0, 0], sizes = [2, 96], strides = [1, 1]} : vector<2x128xf32> to vector<2x96xf32>
    %483 = arith.negf %482 : vector<2x96xf32>
    %484 = math.exp %483 : vector<2x96xf32>
    %cst_81 = arith.constant 1.000000e+00 : f32
    %485 = vector.broadcast %cst_81 : f32 to vector<2x96xf32>
    %486 = arith.addf %485, %484 : vector<2x96xf32>
    %487 = arith.divf %485, %486 : vector<2x96xf32>
    %488 = vector.extract_strided_slice %481 {offsets = [0, 96], sizes = [2, 32], strides = [1, 1]} : vector<2x128xf32> to vector<2x32xf32>
    %489 = math.tanh %488 : vector<2x32xf32>
    %490 = vector.extract_strided_slice %487 {offsets = [0, 32], sizes = [2, 32], strides = [1, 1]} : vector<2x96xf32> to vector<2x32xf32>
    %491 = arith.mulf %490, %474 : vector<2x32xf32>
    %492 = vector.extract_strided_slice %487 {offsets = [0, 0], sizes = [2, 32], strides = [1, 1]} : vector<2x96xf32> to vector<2x32xf32>
    %493 = arith.mulf %492, %489 : vector<2x32xf32>
    %494 = arith.addf %491, %493 : vector<2x32xf32>
    %495 = vector.extract_strided_slice %487 {offsets = [0, 64], sizes = [2, 32], strides = [1, 1]} : vector<2x96xf32> to vector<2x32xf32>
    %496 = math.tanh %494 : vector<2x32xf32>
    %497 = arith.mulf %495, %496 : vector<2x32xf32>
    %498 = vector.extract_strided_slice %497 {offsets = [0, 0], sizes = [2, 16], strides = [1, 1]} : vector<2x32xf32> to vector<2x16xf32>
    %499 = vector.extract_strided_slice %497 {offsets = [0, 16], sizes = [2, 16], strides = [1, 1]} : vector<2x32xf32> to vector<2x16xf32>
    %cst_82 = arith.constant dense<0.000000e+00> : vector<2x128xf32>
    %500 = tpu.matmul %497, %417, %cst_82 {dimension_numbers = #tpu.dot_dimension_numbers<[1], [0], [0], [1], [0, 0, 1, 1], [], []>} : vector<2x32xf32>, vector<32x128xf32>, vector<2x128xf32> -> vector<2x128xf32>
    %501 = arith.addf %395, %500 : vector<2x128xf32>
    %502 = vector.extract_strided_slice %501 {offsets = [0, 0], sizes = [2, 96], strides = [1, 1]} : vector<2x128xf32> to vector<2x96xf32>
    %503 = arith.negf %502 : vector<2x96xf32>
    %504 = math.exp %503 : vector<2x96xf32>
    %cst_83 = arith.constant 1.000000e+00 : f32
    %505 = vector.broadcast %cst_83 : f32 to vector<2x96xf32>
    %506 = arith.addf %505, %504 : vector<2x96xf32>
    %507 = arith.divf %505, %506 : vector<2x96xf32>
    %508 = vector.extract_strided_slice %501 {offsets = [0, 96], sizes = [2, 32], strides = [1, 1]} : vector<2x128xf32> to vector<2x32xf32>
    %509 = math.tanh %508 : vector<2x32xf32>
    %510 = vector.extract_strided_slice %507 {offsets = [0, 32], sizes = [2, 32], strides = [1, 1]} : vector<2x96xf32> to vector<2x32xf32>
    %511 = arith.mulf %510, %494 : vector<2x32xf32>
    %512 = vector.extract_strided_slice %507 {offsets = [0, 0], sizes = [2, 32], strides = [1, 1]} : vector<2x96xf32> to vector<2x32xf32>
    %513 = arith.mulf %512, %509 : vector<2x32xf32>
    %514 = arith.addf %511, %513 : vector<2x32xf32>
    %515 = vector.extract_strided_slice %507 {offsets = [0, 64], sizes = [2, 32], strides = [1, 1]} : vector<2x96xf32> to vector<2x32xf32>
    %516 = math.tanh %514 : vector<2x32xf32>
    %517 = arith.mulf %515, %516 : vector<2x32xf32>
    %518 = vector.extract_strided_slice %517 {offsets = [0, 0], sizes = [2, 16], strides = [1, 1]} : vector<2x32xf32> to vector<2x16xf32>
    %519 = vector.extract_strided_slice %517 {offsets = [0, 16], sizes = [2, 16], strides = [1, 1]} : vector<2x32xf32> to vector<2x16xf32>
    %cst_84 = arith.constant dense<0.000000e+00> : vector<2x128xf32>
    %520 = tpu.matmul %517, %417, %cst_84 {dimension_numbers = #tpu.dot_dimension_numbers<[1], [0], [0], [1], [0, 0, 1, 1], [], []>} : vector<2x32xf32>, vector<32x128xf32>, vector<2x128xf32> -> vector<2x128xf32>
    %521 = arith.addf %402, %520 : vector<2x128xf32>
    %522 = vector.extract_strided_slice %521 {offsets = [0, 0], sizes = [2, 96], strides = [1, 1]} : vector<2x128xf32> to vector<2x96xf32>
    %523 = arith.negf %522 : vector<2x96xf32>
    %524 = math.exp %523 : vector<2x96xf32>
    %cst_85 = arith.constant 1.000000e+00 : f32
    %525 = vector.broadcast %cst_85 : f32 to vector<2x96xf32>
    %526 = arith.addf %525, %524 : vector<2x96xf32>
    %527 = arith.divf %525, %526 : vector<2x96xf32>
    %528 = vector.extract_strided_slice %521 {offsets = [0, 96], sizes = [2, 32], strides = [1, 1]} : vector<2x128xf32> to vector<2x32xf32>
    %529 = math.tanh %528 : vector<2x32xf32>
    %530 = vector.extract_strided_slice %527 {offsets = [0, 32], sizes = [2, 32], strides = [1, 1]} : vector<2x96xf32> to vector<2x32xf32>
    %531 = arith.mulf %530, %514 : vector<2x32xf32>
    %532 = vector.extract_strided_slice %527 {offsets = [0, 0], sizes = [2, 32], strides = [1, 1]} : vector<2x96xf32> to vector<2x32xf32>
    %533 = arith.mulf %532, %529 : vector<2x32xf32>
    %534 = arith.addf %531, %533 : vector<2x32xf32>
    %535 = vector.extract_strided_slice %527 {offsets = [0, 64], sizes = [2, 32], strides = [1, 1]} : vector<2x96xf32> to vector<2x32xf32>
    %536 = math.tanh %534 : vector<2x32xf32>
    %537 = arith.mulf %535, %536 : vector<2x32xf32>
    %538 = vector.extract_strided_slice %537 {offsets = [0, 0], sizes = [2, 16], strides = [1, 1]} : vector<2x32xf32> to vector<2x16xf32>
    %539 = vector.extract_strided_slice %537 {offsets = [0, 16], sizes = [2, 16], strides = [1, 1]} : vector<2x32xf32> to vector<2x16xf32>
    %cst_86 = arith.constant dense<0.000000e+00> : vector<2x128xf32>
    %540 = tpu.matmul %537, %417, %cst_86 {dimension_numbers = #tpu.dot_dimension_numbers<[1], [0], [0], [1], [0, 0, 1, 1], [], []>} : vector<2x32xf32>, vector<32x128xf32>, vector<2x128xf32> -> vector<2x128xf32>
    %541 = arith.addf %409, %540 : vector<2x128xf32>
    %542 = vector.extract_strided_slice %541 {offsets = [0, 0], sizes = [2, 96], strides = [1, 1]} : vector<2x128xf32> to vector<2x96xf32>
    %543 = arith.negf %542 : vector<2x96xf32>
    %544 = math.exp %543 : vector<2x96xf32>
    %cst_87 = arith.constant 1.000000e+00 : f32
    %545 = vector.broadcast %cst_87 : f32 to vector<2x96xf32>
    %546 = arith.addf %545, %544 : vector<2x96xf32>
    %547 = arith.divf %545, %546 : vector<2x96xf32>
    %548 = vector.extract_strided_slice %541 {offsets = [0, 96], sizes = [2, 32], strides = [1, 1]} : vector<2x128xf32> to vector<2x32xf32>
    %549 = math.tanh %548 : vector<2x32xf32>
    %550 = vector.extract_strided_slice %547 {offsets = [0, 32], sizes = [2, 32], strides = [1, 1]} : vector<2x96xf32> to vector<2x32xf32>
    %551 = arith.mulf %550, %534 : vector<2x32xf32>
    %552 = vector.extract_strided_slice %547 {offsets = [0, 0], sizes = [2, 32], strides = [1, 1]} : vector<2x96xf32> to vector<2x32xf32>
    %553 = arith.mulf %552, %549 : vector<2x32xf32>
    %554 = arith.addf %551, %553 : vector<2x32xf32>
    %555 = vector.extract_strided_slice %547 {offsets = [0, 64], sizes = [2, 32], strides = [1, 1]} : vector<2x96xf32> to vector<2x32xf32>
    %556 = math.tanh %554 : vector<2x32xf32>
    %557 = arith.mulf %555, %556 : vector<2x32xf32>
    %558 = vector.extract_strided_slice %557 {offsets = [0, 0], sizes = [2, 16], strides = [1, 1]} : vector<2x32xf32> to vector<2x16xf32>
    %559 = vector.extract_strided_slice %557 {offsets = [0, 16], sizes = [2, 16], strides = [1, 1]} : vector<2x32xf32> to vector<2x16xf32>
    %cst_88 = arith.constant dense<0.000000e+00> : vector<2x128xf32>
    %560 = tpu.matmul %557, %417, %cst_88 {dimension_numbers = #tpu.dot_dimension_numbers<[1], [0], [0], [1], [0, 0, 1, 1], [], []>} : vector<2x32xf32>, vector<32x128xf32>, vector<2x128xf32> -> vector<2x128xf32>
    %561 = arith.addf %416, %560 : vector<2x128xf32>
    %562 = vector.extract_strided_slice %561 {offsets = [0, 0], sizes = [2, 96], strides = [1, 1]} : vector<2x128xf32> to vector<2x96xf32>
    %563 = arith.negf %562 : vector<2x96xf32>
    %564 = math.exp %563 : vector<2x96xf32>
    %cst_89 = arith.constant 1.000000e+00 : f32
    %565 = vector.broadcast %cst_89 : f32 to vector<2x96xf32>
    %566 = arith.addf %565, %564 : vector<2x96xf32>
    %567 = arith.divf %565, %566 : vector<2x96xf32>
    %568 = vector.extract_strided_slice %561 {offsets = [0, 96], sizes = [2, 32], strides = [1, 1]} : vector<2x128xf32> to vector<2x32xf32>
    %569 = math.tanh %568 : vector<2x32xf32>
    %570 = vector.extract_strided_slice %567 {offsets = [0, 32], sizes = [2, 32], strides = [1, 1]} : vector<2x96xf32> to vector<2x32xf32>
    %571 = arith.mulf %570, %554 : vector<2x32xf32>
    %572 = vector.extract_strided_slice %567 {offsets = [0, 0], sizes = [2, 32], strides = [1, 1]} : vector<2x96xf32> to vector<2x32xf32>
    %573 = arith.mulf %572, %569 : vector<2x32xf32>
    %574 = arith.addf %571, %573 : vector<2x32xf32>
    %575 = vector.extract_strided_slice %567 {offsets = [0, 64], sizes = [2, 32], strides = [1, 1]} : vector<2x96xf32> to vector<2x32xf32>
    %576 = math.tanh %574 : vector<2x32xf32>
    %577 = arith.mulf %575, %576 : vector<2x32xf32>
    %578 = vector.extract_strided_slice %577 {offsets = [0, 0], sizes = [2, 16], strides = [1, 1]} : vector<2x32xf32> to vector<2x16xf32>
    %579 = vector.extract_strided_slice %577 {offsets = [0, 16], sizes = [2, 16], strides = [1, 1]} : vector<2x32xf32> to vector<2x16xf32>
    %580 = tpu.concatenate %438, %579 in 1 : vector<2x16xf32>, vector<2x16xf32> -> vector<2x32xf32>
    %581 = tpu.concatenate %458, %559 in 1 : vector<2x16xf32>, vector<2x16xf32> -> vector<2x32xf32>
    %582 = tpu.concatenate %478, %539 in 1 : vector<2x16xf32>, vector<2x16xf32> -> vector<2x32xf32>
    %583 = tpu.concatenate %498, %519 in 1 : vector<2x16xf32>, vector<2x16xf32> -> vector<2x32xf32>
    %584 = tpu.concatenate %518, %499 in 1 : vector<2x16xf32>, vector<2x16xf32> -> vector<2x32xf32>
    %585 = tpu.concatenate %538, %479 in 1 : vector<2x16xf32>, vector<2x16xf32> -> vector<2x32xf32>
    %586 = tpu.concatenate %558, %459 in 1 : vector<2x16xf32>, vector<2x16xf32> -> vector<2x32xf32>
    %587 = tpu.concatenate %578, %439 in 1 : vector<2x16xf32>, vector<2x16xf32> -> vector<2x32xf32>
    %588 = vector.shape_cast %117 : vector<16x32xf32> to vector<2x8x32xf32>
    %cst_90 = arith.constant 0.000000e+00 : f32
    %589 = vector.broadcast %cst_90 : f32 to vector<2x8x32xf32>
    %590 = arith.maximumf %588, %589 : vector<2x8x32xf32>
    %cst_91 = arith.constant dense<0xFF800000> : vector<2x32xf32>
    %591 = vector.multi_reduction <maximumf>, %590, %cst_91 [1] : vector<2x8x32xf32> to vector<2x32xf32>
    %592 = tpu.concatenate %580, %581, %582, %583, %584, %585, %586, %587 in 0 : vector<2x32xf32>, vector<2x32xf32>, vector<2x32xf32>, vector<2x32xf32>, vector<2x32xf32>, vector<2x32xf32>, vector<2x32xf32>, vector<2x32xf32> -> vector<16x32xf32>
    %593 = vector.shape_cast %592 : vector<16x32xf32> to vector<8x2x32xf32>
    %cst_92 = arith.constant 0.000000e+00 : f32
    %594 = vector.broadcast %cst_92 : f32 to vector<8x2x32xf32>
    %595 = arith.maximumf %593, %594 : vector<8x2x32xf32>
    %cst_93 = arith.constant dense<0xFF800000> : vector<2x32xf32>
    %596 = vector.multi_reduction <maximumf>, %595, %cst_93 [0] : vector<8x2x32xf32> to vector<2x32xf32>
    %597 = tpu.concatenate %591, %596 in 1 : vector<2x32xf32>, vector<2x32xf32> -> vector<2x64xf32>
    %c416 = arith.constant 416 : index
    %c0_94 = arith.constant 0 : index
    %598 = vector.load %arg2[%c416, %c0_94] : memref<480x128xf32, #tpu.memory_space<vmem>>, vector<64x3xf32>
    %cst_95 = arith.constant dense<0.000000e+00> : vector<2x3xf32>
    %599 = tpu.matmul %597, %598, %cst_95 {dimension_numbers = #tpu.dot_dimension_numbers<[1], [0], [0], [1], [0, 0, 1, 1], [], []>} : vector<2x64xf32>, vector<64x3xf32>, vector<2x3xf32> -> vector<2x3xf32>
    %c8 = arith.constant 8 : index
    %c0_96 = arith.constant 0 : index
    %600 = vector.load %arg3[%c8, %c0_96] : memref<16x128xf32, #tpu.memory_space<vmem>>, vector<1x3xf32>
    %601 = vector.broadcast %600 : vector<1x3xf32> to vector<2x3xf32>
    %602 = arith.addf %599, %601 : vector<2x3xf32>
    %c0_97 = arith.constant 0 : index
    %c0_98 = arith.constant 0 : index
    %603 = vector.load %arg4[%c0_97, %c0_98] : memref<2x3xf32, #tpu.memory_space<vmem>>, vector<2x3xf32>
    tpu.vector_store %arg4[%c0_97, %c0_98], %602 {strides = array<i32>} : memref<2x3xf32, #tpu.memory_space<vmem>>, vector<2x3xf32>,
    return
  }
}

</mosaic_0001>

<bundles_post_ra>
// kernel: forward.1
= control target key start
LH: loop header
LB: loop body
LE: loop exit
PB: predicated region body
PF: predicated region fallthrough
CT: control target
= control target key end

     0   :  { %9 = vsyncpa [#allocation3], 0  ;;  %s4746_s0 = inlined_call_operand.vmem [shape: s32[16,1], index: 0, kind: input, shape index: {}]   ;;  %s4747_s1 = inlined_call_operand.vmem [shape: f32[2,8], index: 1, kind: input, shape index: {}]   ;;  %s4748_s2 = inlined_call_operand.hbm [shape: f32[480,128], index: 2, kind: input, shape index: {}]   ;;  %s4749_s3 = inlined_call_operand.vmem [shape: f32[16,128], index: 3, kind: input, shape index: {}]   ;;  %s4750_s4 = inlined_call_operand.hbm [shape: f32[2,3], index: 4, kind: output, shape index: {}]  }
   0x1   :  { %10 = vsyncpa [#allocation4], 0  ;;  %s4097_s15 = smov [#allocation2]   ;;  %s4049_s19 = scalar_lea.hbm %s4748_s2, 7680 }
   0x2   :  { %s20_s16 = sshll.u32 %s4097_s15, 4  ;;  %p4050_p0 = scmp.ne.s32.totalorder %s4748_s2, %s4049_s19  ;;  %s21_s16 = int_to_ptr.vmem [resolvable:$true] %s20_s16 }
   0x3   :  { %p4053_p1 = scmp.lt.u32.totalorder %s4049_s19, %s4748_s2 }
   0x5   :  { %p4055_p2 = pnand %p4053_p1, %p4050_p0 }
   0x7   :  { %4058 = shalt.err (!%p4055_p2)
}
   0x8   :  { %s4059_s24 = scalar_lea.vmem %s21_s16, 7680  ;;  %p4064_p4 = scmp.lt.s32.totalorder %s21_s16, %s21_s16 }
   0x9   :  { %p4060_p3 = scmp.ne.s32.totalorder %s21_s16, %s4059_s24  ;;  %p4065_p5 = scmp.lt.s32.totalorder %s4059_s24, %s4059_s24 }
   0xb   :  { %p4066_p6 = por %p4065_p5, %p4064_p4 }
   0xd   :  { %p4067_p7 = pnand %p4066_p6, %p4060_p3 }
   0xf   :  { %4070 = shalt.err (!%p4067_p7)
}
  0x10   :  { %s4098_s25 = smov 128   ;;  %s4099_s26 = smov 8  }
  0x11   :  { %26 = dma.hbm_to_vmem [thread:$0]  %s4748_s2, 7680, %s21_s16, [#allocation3], %s4098_s25, %s4098_s25, %s4099_s26  }
  0x12   :  { %4093 = dma.done.wait [#allocation3], 7680  }
  0x13   :  { %4094 = vsyncadd [#allocation3], 4294959616  ;;  %v4100_v0 = vmov 0   ;;  %v32_v1 = vld [vmem:[%s4746_s0] sm:$0xff]  ;;  %v49_v3 = vld [vmem:[#allocation2 + $0x8] sm:$0xff]  ;;  %v4101_v16 = vmov 0.0   ;;  %v34_v17 = vlaneseq }
  0x14   :  { %3900 = vset.pattern.permute.xlu0 %v4100_v0  ;;  %v48_v2 = vld [vmem:[#allocation2] sm:$0xff]  ;;  %v50_v4 = vld [vmem:[#allocation2 + $0x10] sm:$0xff]  ;;  %v51_v5 = vld [vmem:[#allocation2 + $0x18] sm:$0xff]  ;;  %vm56_vm0 = vcmask 457728   ;;  %vm142_vm3 = vcmask 261120   ;;  %vm4102_vm4 = vmmov 0  }
  0x15   :  { %37 = vperm.xlu0 %3900, %v32_v1   ;;  %v33_v6 = vld [vmem:[%s4746_s0 + $0x8] sm:$0xff]  ;;  %v3695_v7 = vpack.c.bf16 %v49_v3, %v48_v2  ;;  %v3699_v8 = vpack.c.bf16 %v51_v5, %v50_v4  ;;  %v52_v9 = vld [vmem:[#allocation2 + $0x20] sm:$0xff]  ;;  %v54_v15 = vld [vmem:[#allocation2 + $0x30] sm:$0xff]  ;;  %v4154_v18 = vand.u32 127, %v34_v17  ;;  %s4103_s0 = smov 96   ;;  %v4183_v37 = vshrl.u32 %v34_v17, 7 }
  0x16   :  { %v53_v10 = vld [vmem:[#allocation2 + $0x28] sm:$0xff]  ;;  %v138_v12 = vld [vmem:[#allocation2 + $0x40] sm:$0xff]  ;;  %v140_v23 = vld [vmem:[#allocation2 + $0x50] sm:$0xff]  ;;  %v4104_v35 = vmov 1966171168   ;;  %vm424_vm5 = vcmask 64512  }
  0x17   :  { %3696 = vmatprep.subr.bf16.mxu0 %v3695_v7  ;;  %v3703_v11 = vpack.c.bf16 %v53_v10, %v52_v9  ;;  %v139_v13 = vld [vmem:[#allocation2 + $0x48] sm:$0xff]  ;;  %v141_v24 = vld [vmem:[#allocation2 + $0x58] sm:$0xff]  ;;  %v391_v36 = vunpack.c.l.s4 %v4104_v35  ;;  %v3166_v40 = vld.sshfl [vmem:[%s4747_s1] sm:$0x11 pattern:$0x75316420] }
  0x18   :  { %3698 = vmatpush3.bf16.msra.mxu0 %v3695_v7  ;;  %v3707_v14 = vpack.c.bf16 %v139_v13, %v138_v12  ;;  %v3711_v25 = vpack.c.bf16 %v141_v24, %v140_v23  ;;  %v55_v26 = vld [vmem:[#allocation2 + $0x38] sm:$0xff]  ;;  %v389_v42 = vcombine.high %v3166_v40, %v3166_v40  ;;  %v414_v46 = vsub.s32 0, %v4183_v37  ;;  %s4105_s1 = smov 64   ;;  %v599_v9 = vld [vmem:[#allocation2 + $0x60] sm:$0xff]  ;;  %v600_v10 = vld [vmem:[#allocation2 + $0x68] sm:$0xff]  ;;  %s4107_s22 = smov 32  }
  0x19   :  { %40 = vperm.xlu0 %3900, %v33_v6   ;;  %3700 = vmatprep.subr.bf16.mxu0 %v3699_v8  ;;  %v392_v38 = vunpack.c.0.s8 %v391_v36  ;;  %v3715_v12 = vpack.c.bf16 %v600_v10, %v599_v9  ;;  %v840_v9 = vld [vmem:[#allocation2 + $0xc8] sm:$0xff]  ;;  %vm1081_vm6 = vcmask 1041409   ;;  %vm1926_vm8 = vcmask 130048   ;;  %s4109_s27 = smov [#allocation5]  }
  0x1a   :  { %3708 = vmatprep.subr.bf16.mxu1 %v3707_v14  ;;  %vm1959_vm9 = vcmask 1041408   ;;  %vm1961_vm10 = vcmask 1043456   ;;  %vm1963_vm11 = vcmask 1045504   ;;  %vm3020_vm12 = vcmask 254976   ;;  %s3147_s28 = sshll.u32 %s4109_s27, 4  ;;  %s3148_s28 = int_to_ptr.vmem [resolvable:$true] %s3147_s28 }
  0x1b   :  { %3710 = vmatpush3.bf16.msra.mxu1 %v3707_v14  ;;  %v395_v39 = vsub.s32 %v392_v38, %v4183_v37  ;;  %vm3065_vm13 = vcmask 523264   ;;  %vm3139_vm14 = vcmask 17408   ;;  %s4071_s29 = scalar_lea.vmem %s3148_s28, 32  ;;  %p4076_p9 = scmp.lt.s32.totalorder %s3148_s28, %s3148_s28 }
  0x1c   :  { %3702 = vmatpush3.bf16.msra.mxu0 %v3699_v8  ;;  %3712 = vmatprep.subr.bf16.mxu1 %v3711_v25  ;;  %p4072_p8 = scmp.ne.s32.totalorder %s3148_s28, %s4071_s29  ;;  %p4077_p10 = scmp.lt.s32.totalorder %s4071_s29, %s4071_s29 }
  0x1d   :  { %3704 = vmatprep.subr.bf16.mxu0 %v3703_v11  ;;  %v396_v41 = vrot.slane %v3166_v40, %v395_v39  ;;  %v403_v44 = vrot.slane %v389_v42, %v395_v39 }
  0x1e   :  { %p4078_p11 = por %p4077_p10, %p4076_p9 }
  0x1f   :  { %3714 = vmatpush3.bf16.msra.mxu1 %v3711_v25  ;;  %v3167_v43 = vadd.f32 -1.0, %v396_v41  ;;  %v3168_v47 = vadd.f32 -1.0, %v403_v44 }
  0x20   :  { %3706 = vmatpush3.bf16.msra.mxu0 %v3703_v11  ;;  %3401 = vmatprep.subr.mxu1 %v4101_v16  ;;  %p4079_p12 = pnand %p4078_p11, %p4072_p8 }
  0x21   :  { %3385 = vmatprep.subr.mxu0 %v54_v15  ;;  %v408_v45 = vmul.f32 1e+09, %v3167_v43  ;;  %v409_v49 = vmul.f32 1e+09, %v3168_v47  ;;  %v729_v47 = vld [vmem:[#allocation2 + $0x90] sm:$0xff] }
  0x23   :  { %v415_v48 = vrot.slane %v408_v45, %v414_v46  ;;  %v419_v54 = vrot.slane %v409_v49, %v414_v46  ;;  %v728_v45 = vld [vmem:[#allocation2 + $0x88] sm:$0xff] }
  0x24   :  { %3386 = vmatpush3.msra.mxu0 %v54_v15 }
  0x25   :  { %3411 = vmatprep.subr.mxu0 %v4101_v16 }
  0x94   :  { %v38_v19 = vpop.permute.xlu0 %37 }
  0x95   :  { %vm42_vm1 = vcmp.eq.s32.totalorder %v4154_v18, %v38_v19 }
  0x96   :  { %v3156_v20 = vsel %vm42_vm1, 1.0, %v4101_v16 }
  0x97   :  { %3387 = vmatprep.mubr.msk.f32.mxu0 %vm56_vm0, %v3156_v20  ;;  %v601_v20 = vld [vmem:[#allocation2 + $0x70] sm:$0xff] }
  0x98   :  { %v41_v21 = vpop.permute.xlu0 %40 }
  0x99   :  { %vm43_vm2 = vcmp.eq.s32.totalorder %v4154_v18, %v41_v21  ;;  %v602_v21 = vld [vmem:[#allocation2 + $0x78] sm:$0xff] }
  0x9a   :  { %v3157_v22 = vsel %vm43_vm2, 1.0, %v4101_v16 }
  0x9b   :  { %3388 = vmatmul.mubr.msk.f32.vlgmr.msra.gmra.mrb[0].mxu0 %vm56_vm0, %v3157_v22  ;;  %v3719_v22 = vpack.c.bf16 %v602_v21, %v601_v20  ;;  %v846_v20 = vld [vmem:[#allocation2 + $0xf8] sm:$0xff] }
  0x9c   :  { %3413 = vmatprep.mubr.msk.f32.mxu0 %vm4102_vm4, %v4101_v16 }
 0x16e   :  { %v3389_v27 = vpop.f32.mrb[0].mxu0 }
 0x16f   :  { %v129_v28 = vpop.f32.mrb[1].mxu0  ;;  %v4163_v30 = vadd.f32 %v3389_v27, %v55_v26 }
 0x170   :  { %v4161_v29 = vadd.f32 %v129_v28, %v55_v26 }
 0x172   :  { %3398 = vmatprep.mubr.msk.f32.mxu1 %vm142_vm3, %v4161_v29 }
 0x173   :  { %3399 = vmatmul.mubr.msk.f32.vlgmr.msra.gmra.mrb[0].mxu1 %vm142_vm3, %v4163_v30 }
 0x174   :  { %3403 = vmatprep.mubr.msk.f32.mxu1 %vm4102_vm4, %v4101_v16 }
 0x246   :  { %v3400_v31 = vpop.f32.mrb[0].mxu1 }
 0x247   :  { %v215_v32 = vpop.f32.mrb[1].mxu1 }
 0x248   :  { %226 = vrot.lane.b32.xlu1 %v215_v32, %s4103_s0 }
 0x24c   :  { %303 = vrot.lane.b32.xlu1 %v3400_v31, %s4103_s0 }
 0x2ba   :  { %v227_v33 = vpop.permute.xlu1 %226 }
 0x2bb   :  { %3402 = vmatpush3.xpose.msk.msra.mxu1 %vm142_vm3, %v227_v33 }
 0x2bc   :  { %3406 = vmatprep.subr.mxu1 %v4101_v16 }
 0x2be   :  { %3404 = vmatmul.mubr.msk.f32.vlgmr.msra.gmra.mrb[2].mxu1 %vm142_vm3, %v215_v32  ;;  %v304_v34 = vpop.permute.xlu1 %303 }
 0x2bf   :  { %3407 = vmatpush3.xpose.msk.msra.mxu1 %vm142_vm3, %v304_v34  ;;  %3408 = vmatprep.mubr.msk.f32.mxu1 %vm4102_vm4, %v4101_v16 }
 0x2c0   :  { %3416 = vmatprep.subr.mxu1 %v4101_v16 }
 0x2c2   :  { %3409 = vmatmul.mubr.msk.f32.vlgmr.msra.gmra.mrb[4].mxu1 %vm142_vm3, %v3400_v31 }
 0x2c3   :  { %3418 = vmatprep.mubr.msk.f32.mxu1 %vm4102_vm4, %v4101_v16 }
 0x391   :  { %v298_v50 = vpop.f32.mrb[2].mxu1 }
 0x392   :  { %v379_v51 = vmul.f32 0.17677669, %v298_v50  ;;  %v3405_v52 = vpop.f32.mrb[3].mxu1 }
 0x394   :  { %v422_v53 = vadd.f32 %v415_v48, %v379_v51  ;;  %v730_v48 = vld [vmem:[#allocation2 + $0x98] sm:$0xff] }
 0x395   :  { %v375_v55 = vpop.f32.mrb[4].mxu1  ;;  %v3727_v49 = vpack.c.bf16 %v730_v48, %v729_v47 }
 0x396   :  { %v380_v56 = vmul.f32 0.17677669, %v375_v55  ;;  %v3410_v57 = vpop.f32.mrb[5].mxu1  ;;  %v425_v58 = vsel %vm424_vm5, %v422_v53, -inf }
 0x397   :  { %426 = vmax.xlane.f32.xlu0 %v425_v58  ;;  %v3173_v57 = vld [vmem:[%s4749_s3 + $0x2] ss:$0 sm:$0xff] }
 0x398   :  { %v423_v59 = vadd.f32 %v419_v54, %v380_v56 }
 0x39a   :  { %v428_v60 = vsel %vm424_vm5, %v423_v59, -inf }
 0x39b   :  { %429 = vmax.xlane.f32.xlu1 %v428_v60 }
 0x3ac   :  { %447 = vrot.lane.b32.xlu1 %v215_v32, %s4105_s1 }
 0x424   :  { %v427_v61 = vpop.xlane.xlu0 %426 }
 0x425   :  { %v431_v62 = vsub.f32 %v422_v53, %v427_v61  ;;  %v3174_v61 = vld [vmem:[%s4749_s3 + $0x3] ss:$0 sm:$0xff] }
 0x427   :  { %v433_v63 = vmul.f32 1.442695, %v431_v62 }
 0x428   :  { %v430_v0 = vpop.xlane.xlu1 %429 }
 0x429   :  { %3901 = vpow2.f32 %v433_v63  ;;  %v432_v1 = vsub.f32 %v423_v59, %v430_v0 }
 0x42b   :  { %v435_v2 = vmul.f32 1.442695, %v432_v1 }
 0x42c   :  { %v448_v3 = vpop.permute.xlu1 %447 }
 0x42d   :  { %3903 = vpow2.f32 %v435_v2  ;;  %3412 = vmatpush3.msra.mxu0 %v448_v3  ;;  %v835_v2 = vld [vmem:[#allocation2 + $0xa0] sm:$0xff]  ;;  %v836_v3 = vld [vmem:[#allocation2 + $0xa8] sm:$0xff] }
 0x433   :  { %v3902_v4 = vpop.eup %3901 }
 0x434   :  { %v437_v5 = vsel %vm424_vm5, %v3902_v4, 0.0 }
 0x435   :  { %438 = vadd.xlane.f32.xlu0 %v437_v5  ;;  %v837_v5 = vld [vmem:[#allocation2 + $0xb0] sm:$0xff] }
 0x437   :  { %v3904_v6 = vpop.eup %3903 }
 0x438   :  { %v440_v7 = vsel %vm424_vm5, %v3904_v6, 0.0 }
 0x439   :  { %441 = vadd.xlane.f32.xlu0 %v440_v7 }
 0x44f   :  { %523 = vrot.lane.b32.xlu0 %v3400_v31, %s4105_s1 }
 0x4c2   :  { %v439_v8 = vpop.xlane.xlu0 %438 }
 0x4c3   :  { %3905 = vrcp.f32 %v439_v8  ;;  %v839_v8 = vld [vmem:[#allocation2 + $0xc0] sm:$0xff] }
 0x4c4   :  { %v3739_v10 = vpack.c.bf16 %v840_v9, %v839_v8  ;;  %v987_v8 = vld [vmem:[#allocation2 + $0x128] sm:$0xff] }
 0x4c6   :  { %v442_v11 = vpop.xlane.xlu0 %441 }
 0x4c7   :  { %3907 = vrcp.f32 %v442_v11  ;;  %v841_v11 = vld [vmem:[#allocation2 + $0xd0] sm:$0xff] }
 0x4ca   :  { %v524_v13 = vpop.permute.xlu0 %523 }
 0x4cb   :  { %3417 = vmatpush3.msra.mxu1 %v524_v13 }
 0x4cc   :  { %3716 = vmatprep.subr.bf16.mxu1 %v3715_v12 }
 0x4cd   :  { %v3906_v14 = vpop.eup %3905 }
 0x4ce   :  { %v444_v15 = vmul.f32 %v3906_v14, %v3902_v4  ;;  %v3731_v4 = vpack.c.bf16 %v836_v3, %v835_v2  ;;  %v843_v14 = vld [vmem:[#allocation2 + $0xe0] sm:$0xff] }
 0x4d0   :  { %3414 = vmatmul.mubr.msk.f32.vlgmr.msra.gmra.mrb[2].mxu0 %vm424_vm5, %v444_v15  ;;  %3732 = vmatprep.subr.bf16.mxu0 %v3731_v4  ;;  %v844_v15 = vld [vmem:[#allocation2 + $0xe8] sm:$0xff] }
 0x4d1   :  { %v3908_v17 = vpop.eup %3907  ;;  %3734 = vmatpush3.bf16.msra.mxu0 %v3731_v4 }
 0x4d2   :  { %v446_v19 = vmul.f32 %v3908_v17, %v3904_v6  ;;  %v838_v6 = vld [vmem:[#allocation2 + $0xb8] sm:$0xff]  ;;  %v845_v17 = vld [vmem:[#allocation2 + $0xf0] sm:$0xff] }
 0x4d3   :  { %v3735_v7 = vpack.c.bf16 %v838_v6, %v837_v5  ;;  %v3751_v21 = vpack.c.bf16 %v846_v20, %v845_v17  ;;  %v4106_v17 = vmov 0.0|0.0   ;;  %v1122_v20 = vld [vmem:[#allocation2 + $0x158] sm:$0xff] }
 0x4d4   :  { %3419 = vmatmul.mubr.msk.f32.vlgmr.msra.gmra.mrb[6].mxu1 %vm424_vm5, %v446_v19  ;;  %v3747_v19 = vpack.c.bf16 %v844_v15, %v843_v14  ;;  %v1120_v14 = vld [vmem:[#allocation2 + $0x148] sm:$0xff] }
 0x4d5   :  { %3718 = vmatpush3.bf16.msra.mxu1 %v3715_v12  ;;  %3736 = vmatprep.subr.bf16.mxu0 %v3735_v7  ;;  %v842_v12 = vld [vmem:[#allocation2 + $0xd8] sm:$0xff] }
 0x4d6   :  { %3720 = vmatprep.subr.bf16.mxu1 %v3719_v22  ;;  %3738 = vmatpush3.bf16.msra.mxu0 %v3735_v7  ;;  %v3743_v13 = vpack.c.bf16 %v842_v12, %v841_v11  ;;  %v989_v11 = vld [vmem:[#allocation2 + $0x138] sm:$0xff] }
 0x4d7   :  { %3740 = vmatprep.subr.bf16.mxu0 %v3739_v10 }
 0x4d9   :  { %3722 = vmatpush3.bf16.msra.mxu1 %v3719_v22  ;;  %v847_v22 = vld [vmem:[#allocation2 + $0x100] sm:$0xff] }
 0x4da   :  { %3742 = vmatpush3.bf16.msra.mxu0 %v3739_v10  ;;  %v988_v10 = vld [vmem:[#allocation2 + $0x130] sm:$0xff] }
 0x4db   :  { %3744 = vmatprep.subr.bf16.mxu0 %v3743_v13  ;;  %v3767_v12 = vpack.c.bf16 %v989_v11, %v988_v10 }
 0x4de   :  { %3746 = vmatpush3.bf16.msra.mxu0 %v3743_v13  ;;  %v1119_v13 = vld [vmem:[#allocation2 + $0x140] sm:$0xff] }
 0x4df   :  { %3748 = vmatprep.subr.bf16.mxu0 %v3747_v19  ;;  %v4234_v15 = vpack.c.bf16 %v1120_v14, %v1119_v13 }
 0x4e2   :  { %3750 = vmatpush3.bf16.msra.mxu0 %v3747_v19  ;;  %v1121_v19 = vld [vmem:[#allocation2 + $0x150] sm:$0xff] }
 0x4e3   :  { %3752 = vmatprep.subr.bf16.mxu0 %v3751_v21 }
 0x4e6   :  { %3754 = vmatpush3.bf16.msra.mxu0 %v3751_v21  ;;  %v4240_v21 = vpack.c.bf16 %v1122_v20, %v1121_v19 }
 0x5a3   :  { %v519_v23 = vpop.f32.mrb[2].mxu0 }
 0x5a4   :  { %v3415_v24 = vpop.f32.mrb[3].mxu0  ;;  %3429 = vmatprep.mubr.msk.f32.mxu1 %vm142_vm3, %v519_v23  ;;  %v848_v23 = vld [vmem:[#allocation2 + $0x108] sm:$0xff] }
 0x5a5   :  { %v3755_v24 = vpack.c.bf16 %v848_v23, %v847_v22 }
 0x5a7   :  { %v595_v25 = vpop.f32.mrb[6].mxu1  ;;  %3756 = vmatprep.subr.bf16.mxu0 %v3755_v24 }
 0x5a8   :  { %v3420_v26 = vpop.f32.mrb[7].mxu1  ;;  %3430 = vmatmul.mubr.msk.f32.vlgmr.msra.gmra.mrb[8].mxu1 %vm142_vm3, %v595_v25  ;;  %v849_v25 = vld [vmem:[#allocation2 + $0x110] sm:$0xff]  ;;  %3758 = vmatpush3.bf16.msra.mxu0 %v3755_v24 }
 0x5a9   :  { %v850_v26 = vld [vmem:[#allocation2 + $0x118] sm:$0xff] }
 0x67b   :  { %v3431_v27 = vpop.f32.mrb[8].mxu1 }
 0x67c   :  { %v685_v28 = vadd.f32 %v3431_v27, %v4163_v30  ;;  %v675_v31 = vpop.f32.mrb[9].mxu1  ;;  %v3759_v27 = vpack.c.bf16 %v850_v26, %v849_v25 }
 0x67d   :  { %v684_v32 = vadd.f32 %v675_v31, %v4161_v29  ;;  %v727_v29 = vld [vmem:[#allocation2 + $0x80] sm:$0xff] }
 0x67e   :  { %v691_v33 = vsel %vm142_vm3, %v685_v28, 0.0  ;;  %v3723_v46 = vpack.c.bf16 %v728_v45, %v727_v29  ;;  %3760 = vmatprep.subr.bf16.mxu0 %v3759_v27 }
 0x67f   :  { %692 = vadd.xlane.f32.xlu0 %v691_v33  ;;  %v688_v34 = vsel %vm142_vm3, %v684_v32, 0.0  ;;  %3762 = vmatpush3.bf16.msra.mxu0 %v3759_v27 }
 0x680   :  { %689 = vadd.xlane.f32.xlu1 %v688_v34  ;;  %3724 = vmatprep.subr.bf16.mxu1 %v3723_v46 }
 0x681   :  { %3726 = vmatpush3.bf16.msra.mxu1 %v3723_v46  ;;  %3789 = vmatprep.subr.bf16.mxu0 %v4106_v17 }
 0x682   :  { %3728 = vmatprep.subr.bf16.mxu1 %v3727_v49 }
 0x685   :  { %3730 = vmatpush3.bf16.msra.mxu1 %v3727_v49 }
 0x70c   :  { %v693_v35 = vpop.xlane.xlu0 %692 }
 0x70d   :  { %v696_v36 = vmul.f32 0.03125, %v693_v35  ;;  %v690_v38 = vpop.xlane.xlu1 %689 }
 0x70e   :  { %v695_v39 = vmul.f32 0.03125, %v690_v38 }
 0x70f   :  { %v698_v40 = vsub.f32 %v685_v28, %v696_v36  ;;  %v3175_v28 = vld [vmem:[%s4749_s3] ss:$0 sm:$0xff] }
 0x710   :  { %v697_v41 = vsub.f32 %v684_v32, %v695_v39 }
 0x711   :  { %v700_v42 = vmul.f32 %v698_v40, %v698_v40 }
 0x712   :  { %v699_v43 = vmul.f32 %v697_v41, %v697_v41 }
 0x713   :  { %v704_v44 = vsel %vm142_vm3, %v700_v42, 0.0 }
 0x714   :  { %705 = vadd.xlane.f32.xlu0 %v704_v44  ;;  %v701_v30 = vsel %vm142_vm3, %v699_v43, 0.0 }
 0x715   :  { %702 = vadd.xlane.f32.xlu1 %v701_v30 }
 0x7a1   :  { %v706_v50 = vpop.xlane.xlu0 %705 }
 0x7a2   :  { %v708_v51 = vmul.f32 0.03125, %v706_v50  ;;  %v703_v52 = vpop.xlane.xlu1 %702 }
 0x7a3   :  { %v707_v53 = vmul.f32 0.03125, %v703_v52  ;;  %v3178_v52 = vld [vmem:[%s4749_s3 + $0x1] ss:$0 sm:$0xff] }
 0x7a4   :  { %v710_v54 = vadd.f32 1e-12, %v708_v51 }
 0x7a5   :  { %v709_v55 = vadd.f32 1e-12, %v707_v53 }
 0x7a6   :  { %3909 = vrsqrt.f32 %v710_v54 }
 0x7a7   :  { %3911 = vrsqrt.f32 %v709_v55 }
 0x7b0   :  { %v3910_v56 = vpop.eup %3909 }
 0x7b1   :  { %v3912_v58 = vpop.eup %3911  ;;  %v714_v59 = vmul.f32 %v3910_v56, %v698_v40 }
 0x7b2   :  { %v713_v60 = vmul.f32 %v3912_v58, %v697_v41 }
 0x7b3   :  { %v720_v62 = vmul.f32 %v3173_v57, %v714_v59 }
 0x7b4   :  { %v719_v63 = vmul.f32 %v3173_v57, %v713_v60 }
 0x7b5   :  { %v4214_v1 = vadd.f32 %v3174_v61, %v720_v62 }
 0x7b6   :  { %v4212_v0 = vadd.f32 %v3174_v61, %v719_v63 }
 0x7b8   :  { %3440 = vmatprep.mubr.msk.f32.mxu1 %vm142_vm3, %v4212_v0 }
 0x7b9   :  { %3441 = vmatmul.mubr.msk.f32.vlgmr.msra.gmra.mrb[10].mxu1 %vm142_vm3, %v4214_v1 }
 0x88c   :  { %v3442_v31 = vpop.f32.mrb[10].mxu1 }
 0x88d   :  { %v814_v32 = vadd.f32 %v3442_v31, %v3175_v28  ;;  %v808_v33 = vpop.f32.mrb[11].mxu1  ;;  %v3179_v31 = vld [vmem:[%s4749_s3 + $0x4] ss:$0 sm:$0xff] }
 0x88e   :  { %v809_v34 = vadd.f32 %v3175_v28, %v808_v33 }
 0x88f   :  { %v818_v35 = vmul.f32 %v814_v32, %v814_v32 }
 0x890   :  { %v817_v36 = vmul.f32 %v809_v34, %v809_v34 }
 0x891   :  { %v820_v38 = vmul.f32 %v818_v35, %v814_v32 }
 0x892   :  { %v819_v39 = vmul.f32 %v817_v36, %v809_v34 }
 0x893   :  { %v822_v40 = vmul.f32 0.044715, %v820_v38 }
 0x894   :  { %v821_v41 = vmul.f32 0.044715, %v819_v39 }
 0x895   :  { %v824_v42 = vadd.f32 %v822_v40, %v814_v32 }
 0x896   :  { %v823_v43 = vadd.f32 %v821_v41, %v809_v34 }
 0x897   :  { %v826_v44 = vmul.f32 0.7978846, %v824_v42 }
 0x898   :  { %v825_v30 = vmul.f32 0.7978846, %v823_v43 }
 0x899   :  { %3913 = vtanh.f32 %v826_v44 }
 0x89a   :  { %3915 = vtanh.f32 %v825_v30 }
 0x8a3   :  { %v3914_v29 = vpop.eup %3913 }
 0x8a4   :  { %v3916_v45 = vpop.eup %3915  ;;  %v830_v46 = vadd.f32 1.0, %v3914_v29 }
 0x8a5   :  { %v829_v47 = vadd.f32 1.0, %v3916_v45 }
 0x8a6   :  { %v832_v48 = vmul.f32 0.5, %v830_v46 }
 0x8a7   :  { %v831_v49 = vmul.f32 0.5, %v829_v47 }
 0x8a8   :  { %v834_v51 = vmul.f32 %v832_v48, %v814_v32 }
 0x8a9   :  { %v833_v50 = vmul.f32 %v831_v49, %v809_v34  ;;  %v3180_v34 = vld [vmem:[%s4749_s3 + $0x5] ss:$0 sm:$0xff] }
 0x8ab   :  { %3475 = vmatprep.mubr.f32.mxu0 %v833_v50 }
 0x8ac   :  { %3476 = vmatmul.mubr.f32.vlgmr.msra.gmra.mrb[4].mxu0 %v834_v51 }
 0x8ad   :  { %3530 = vmatprep.mubr.msk.f32.mxu0 %vm4102_vm4, %v4101_v16  ;;  %3791 = vmatpush3.bf16.msra.mxu0 %v4234_v15 }
 0x8ae   :  { %3792 = vmatprep.subr.bf16.mxu0 %v4106_v17 }
 0x8b1   :  { %3794 = vmatpush3.bf16.msra.mxu0 %v4240_v21 }
 0x8b2   :  { %3801 = vmatprep.subr.bf16.mxu0 %v4106_v17 }
 0x97f   :  { %v3477_v53 = vpop.f32.mrb[4].mxu0 }
 0x980   :  { %v928_v54 = vadd.f32 %v3477_v53, %v3178_v52  ;;  %v922_v55 = vpop.f32.mrb[5].mxu0 }
 0x981   :  { %v923_v56 = vadd.f32 %v3178_v52, %v922_v55 }
 0x982   :  { %v932_v57 = vadd.f32 %v928_v54, %v4214_v1 }
 0x983   :  { %v931_v58 = vadd.f32 %v923_v56, %v4212_v0  ;;  %v986_v0 = vld [vmem:[#allocation2 + $0x120] sm:$0xff]  ;;  %v977_v56 = vand.u32 31, %v4154_v18 }
 0x984   :  { %v938_v59 = vsel %vm142_vm3, %v932_v57, 0.0  ;;  %v3763_v9 = vpack.c.bf16 %v987_v8, %v986_v0 }
 0x985   :  { %939 = vadd.xlane.f32.xlu0 %v938_v59  ;;  %v935_v60 = vsel %vm142_vm3, %v931_v58, 0.0  ;;  %vm4274_vm7 = vcmp.lt.s32.totalorder %v977_v56, 16 }
 0x986   :  { %936 = vadd.xlane.f32.xlu1 %v935_v60  ;;  %3764 = vmatprep.subr.bf16.mxu1 %v3763_v9 }
 0x987   :  { %3766 = vmatpush3.bf16.msra.mxu1 %v3763_v9 }
 0x988   :  { %3768 = vmatprep.subr.bf16.mxu1 %v3767_v12 }
 0x98b   :  { %3770 = vmatpush3.bf16.msra.mxu1 %v3767_v12 }
 0x98c   :  { %3771 = vmatprep.subr.bf16.mxu1 %v4106_v17 }
 0xa12   :  { %v940_v61 = vpop.xlane.xlu0 %939 }
 0xa13   :  { %v942_v62 = vmul.f32 0.03125, %v940_v61  ;;  %v937_v63 = vpop.xlane.xlu1 %936 }
 0xa14   :  { %v941_v2 = vmul.f32 0.03125, %v937_v63 }
 0xa15   :  { %v944_v3 = vsub.f32 %v932_v57, %v942_v62  ;;  %v3181_v57 = vld [vmem:[%s4749_s3 + $0x6] ss:$0 sm:$0xff] }
 0xa16   :  { %v943_v4 = vsub.f32 %v931_v58, %v941_v2 }
 0xa17   :  { %v946_v5 = vmul.f32 %v944_v3, %v944_v3 }
 0xa18   :  { %v945_v6 = vmul.f32 %v943_v4, %v943_v4 }
 0xa19   :  { %v950_v7 = vsel %vm142_vm3, %v946_v5, 0.0 }
 0xa1a   :  { %951 = vadd.xlane.f32.xlu0 %v950_v7  ;;  %v947_v1 = vsel %vm142_vm3, %v945_v6, 0.0 }
 0xa1b   :  { %948 = vadd.xlane.f32.xlu1 %v947_v1 }
 0xaa7   :  { %v952_v22 = vpop.xlane.xlu0 %951 }
 0xaa8   :  { %v954_v23 = vmul.f32 0.03125, %v952_v22  ;;  %v949_v24 = vpop.xlane.xlu1 %948 }
 0xaa9   :  { %v953_v25 = vmul.f32 0.03125, %v949_v24 }
 0xaaa   :  { %v956_v26 = vadd.f32 1e-12, %v954_v23 }
 0xaab   :  { %v955_v27 = vadd.f32 1e-12, %v953_v25 }
 0xaac   :  { %3917 = vrsqrt.f32 %v956_v26 }
 0xaad   :  { %3919 = vrsqrt.f32 %v955_v27 }
 0xab6   :  { %v3918_v28 = vpop.eup %3917 }
 0xab7   :  { %v3920_v32 = vpop.eup %3919  ;;  %v960_v33 = vmul.f32 %v3918_v28, %v944_v3 }
 0xab8   :  { %v959_v35 = vmul.f32 %v3920_v32, %v943_v4 }
 0xab9   :  { %v966_v36 = vmul.f32 %v3179_v31, %v960_v33 }
 0xaba   :  { %v965_v38 = vmul.f32 %v3179_v31, %v959_v35 }
 0xabb   :  { %v972_v39 = vadd.f32 %v3180_v34, %v966_v36 }
 0xabc   :  { %v971_v40 = vadd.f32 %v3180_v34, %v965_v38 }
 0xabd   :  { %v2929_v41 = vmax.f32 %v972_v39, 0.0 }
 0xabe   :  { %3486 = vmatprep.mubr.msk.f32.mxu1 %vm142_vm3, %v971_v40  ;;  %v2928_v42 = vmax.f32 %v971_v40, 0.0 }
 0xabf   :  { %3487 = vmatmul.mubr.msk.f32.vlgmr.msra.gmra.mrb[12].mxu1 %vm142_vm3, %v972_v39  ;;  %v2937_v43 = vsel %vm142_vm3, %v2929_v41, -inf }
 0xac0   :  { %v2930_v44 = vsel %vm142_vm3, %v2928_v42, -inf  ;;  %3773 = vmatpush3.bf16.msra.mxu1 %v4234_v15  ;;  %3497 = vmatprep.mubr.msk.f32.mxu1 %vm4102_vm4, %v4101_v16  ;;  %v2938_v30 = vrot.slane %v2937_v43, 4 }
 0xac1   :  { %v2931_v29 = vrot.slane %v2930_v44, 4  ;;  %3774 = vmatprep.subr.bf16.mxu1 %v4106_v17 }
 0xac2   :  { %v2939_v45 = vmax.f32 %v2937_v43, %v2938_v30 }
 0xac3   :  { %v2932_v46 = vmax.f32 %v2930_v44, %v2931_v29 }
 0xac4   :  { %3776 = vmatpush3.bf16.msra.mxu1 %v4240_v21  ;;  %v2940_v47 = vrot.slane %v2939_v45, 2 }
 0xac5   :  { %3777 = vmatprep.subr.bf16.mxu1 %v4106_v17  ;;  %v2933_v48 = vrot.slane %v2932_v46, 2 }
 0xac6   :  { %v2941_v49 = vmax.f32 %v2939_v45, %v2940_v47 }
 0xac7   :  { %3498 = vmatmul.mubr.f32.vlgmr.msra.gmra.mrb[14].mxu1 %v4101_v16  ;;  %v2934_v50 = vmax.f32 %v2932_v46, %v2933_v48 }
 0xac8   :  { %3779 = vmatpush3.bf16.msra.mxu1 %v4234_v15  ;;  %3508 = vmatprep.mubr.msk.f32.mxu1 %vm4102_vm4, %v4101_v16  ;;  %v2942_v51 = vrot.slane %v2941_v49, 1 }
 0xac9   :  { %3780 = vmatprep.subr.bf16.mxu1 %v4106_v17  ;;  %v2935_v52 = vrot.slane %v2934_v50, 1 }
 0xaca   :  { %v2943_v53 = vmax.f32 %v2941_v49, %v2942_v51 }
 0xacb   :  { %v2936_v54 = vmax.f32 %v2934_v50, %v2935_v52 }
 0xacc   :  { %3782 = vmatpush3.bf16.msra.mxu1 %v4240_v21 }
 0xacd   :  { %3783 = vmatprep.subr.bf16.mxu1 %v4106_v17  ;;  %v4268_v55 = vsel %vm1081_vm6, %v2943_v53, %v2936_v54 }
 0xb92   :  { %v3488_v58 = vpop.f32.mrb[12].mxu1 }
 0xb93   :  { %v1073_v59 = vadd.f32 %v3488_v58, %v3181_v57  ;;  %v1067_v60 = vpop.f32.mrb[13].mxu1 }
 0xb94   :  { %v1068_v62 = vadd.f32 %v3181_v57, %v1067_v60 }
 0xb95   :  { %v1080_v63 = vrot.slane %v1073_v59, 7  ;;  %v1085_v2 = vrot.slane %v1073_v59, 6  ;;  %v1093_v3 = vrot.slane %v1073_v59, 5  ;;  %v1098_v4 = vrot.slane %v1073_v59, 1 }
 0xb96   :  { %v1084_v5 = vrot.slane %v1068_v62, 7  ;;  %v1089_v6 = vrot.slane %v1068_v62, 1  ;;  %v1092_v7 = vrot.slane %v1068_v62, 6  ;;  %v1097_v18 = vrot.slane %v1068_v62, 2 }
 0xb97   :  { %v4279_v1 = vsel %vm1081_vm6, %v1080_v63, %v1068_v62  ;;  %v1101_v0 = vrot.slane %v1068_v62, 5  ;;  %v1102_v8 = vrot.slane %v1073_v59, 4  ;;  %v1106_v9 = vrot.slane %v1068_v62, 3 }
 0xb98   :  { %v4282_v10 = vsel %vm1081_vm6, %v1085_v2, %v1084_v5  ;;  %v4285_v11 = vsel %vm1081_vm6, %v1073_v59, %v1089_v6  ;;  %v4288_v12 = vsel %vm1081_vm6, %v1093_v3, %v1092_v7  ;;  %v4291_v13 = vsel %vm1081_vm6, %v1098_v4, %v1097_v18 }
 0xb99   :  { %v1088_v14 = vsel %vm4274_vm7, %v4279_v1, %v4282_v10  ;;  %v1096_v19 = vsel %vm4274_vm7, %v4285_v11, %v4288_v12  ;;  %v4302_v20 = vsel %vm1081_vm6, %v1102_v8, %v1101_v0  ;;  %v1107_v22 = vrot.slane %v1073_v59, 2 }
 0xb9a   :  { %v1192_v23 = vpop.f32.mrb[14].mxu1  ;;  %v1105_v24 = vsel %vm4274_vm7, %v4291_v13, %v4302_v20  ;;  %v1110_v25 = vrot.slane %v1068_v62, 4  ;;  %v1111_v26 = vrot.slane %v1073_v59, 3  ;;  %v1116_v27 = vsel %vm4274_vm7, %v4302_v20, %v4291_v13 }
 0xb9b   :  { %v1196_v28 = vadd.f32 %v1192_v23, %v1088_v14  ;;  %v3499_v31 = vpop.f32.mrb[15].mxu1  ;;  %v4313_v32 = vsel %vm1081_vm6, %v1107_v22, %v1106_v9  ;;  %v1117_v33 = vsel %vm4274_vm7, %v4288_v12, %v4285_v11  ;;  %v1118_v34 = vsel %vm4274_vm7, %v4282_v10, %v4279_v1  ;;  %v1968_v1 = vld [vmem:[#allocation2 + $0x160] sm:$0xff]  ;;  %v1969_v10 = vld [vmem:[#allocation2 + $0x168] sm:$0xff] }
 0xb9c   :  { %v4324_v35 = vsel %vm1081_vm6, %v1111_v26, %v1110_v25 }
 0xb9d   :  { %3921 = vtanh.f32 %v1196_v28  ;;  %v1114_v36 = vsel %vm4274_vm7, %v4313_v32, %v4324_v35  ;;  %v1115_v38 = vsel %vm4274_vm7, %v4324_v35, %v4313_v32  ;;  %v3184_v40 = vmul.f32 -1.442695, %v1196_v28 }
 0xb9f   :  { %3923 = vpow2.f32 %v3184_v40 }
 0xba7   :  { %v3922_v39 = vpop.eup %3921 }
 0xba8   :  { %1206 = vrot.lane.b32.xlu1 %v3922_v39, %s4107_s22 }
 0xba9   :  { %v3924_v41 = vpop.eup %3923 }
 0xbaa   :  { %v1200_v42 = vadd.f32 1.0, %v3924_v41 }
 0xbac   :  { %3925 = vrcp.f32 %v1200_v42 }
 0xbb6   :  { %v3926_v43 = vpop.eup %3925 }
 0xbb7   :  { %v1204_v29 = vmul.f32 0.0, %v3926_v43 }
 0xc1a   :  { %v1207_v44 = vpop.permute.xlu1 %1206 }
 0xc1b   :  { %v1209_v30 = vmul.f32 %v3926_v43, %v1207_v44 }
 0xc1d   :  { %1211 = vrot.lane.b32.xlu0 %v1209_v30, %s4107_s22 }
 0xc8f   :  { %v1212_v45 = vpop.permute.xlu0 %1211 }
 0xc90   :  { %v1214_v46 = vadd.f32 %v1212_v45, %v1204_v29 }
 0xc92   :  { %3927 = vtanh.f32 %v1214_v46 }
 0xc9c   :  { %v3928_v47 = vpop.eup %3927 }
 0xc9d   :  { %1217 = vrot.lane.b32.xlu1 %v3928_v47, %s4107_s22 }
 0xd0f   :  { %v1218_v48 = vpop.permute.xlu1 %1217 }
 0xd10   :  { %v1220_v49 = vmul.f32 %v3926_v43, %v1218_v48 }
 0xd12   :  { %1222 = vrot.lane.b32.xlu1 %v1220_v49, %s4105_s1 }
 0xd84   :  { %v4338_v50 = vpop.permute.xlu1 %1222 }
 0xd85   :  { %3509 = vmatmul.mubr.msk.f32.vlgmr.msra.gmra.mrb[16].mxu1 %vm142_vm3, %v4338_v50 }
 0xd86   :  { %3785 = vmatpush3.bf16.msra.mxu1 %v4234_v15  ;;  %3519 = vmatprep.mubr.msk.f32.mxu1 %vm4102_vm4, %v4101_v16 }
 0xd87   :  { %3786 = vmatprep.subr.bf16.mxu1 %v4106_v17 }
 0xd8a   :  { %3788 = vmatpush3.bf16.msra.mxu1 %v4240_v21 }
 0xd8b   :  { %3795 = vmatprep.subr.bf16.mxu1 %v4106_v17 }
 0xe58   :  { %v1292_v51 = vpop.f32.mrb[16].mxu1 }
 0xe59   :  { %v1296_v52 = vadd.f32 %v1292_v51, %v1096_v19  ;;  %v3510_v53 = vpop.f32.mrb[17].mxu1 }
 0xe5b   :  { %3929 = vtanh.f32 %v1296_v52  ;;  %v3186_v56 = vmul.f32 -1.442695, %v1296_v52 }
 0xe5d   :  { %3931 = vpow2.f32 %v3186_v56 }
 0xe65   :  { %v3930_v54 = vpop.eup %3929 }
 0xe66   :  { %1306 = vrot.lane.b32.xlu0 %v3930_v54, %s4107_s22 }
 0xe67   :  { %v3932_v57 = vpop.eup %3931 }
 0xe68   :  { %v1300_v58 = vadd.f32 1.0, %v3932_v57 }
 0xe6a   :  { %3933 = vrcp.f32 %v1300_v58 }
 0xe74   :  { %v3934_v59 = vpop.eup %3933 }
 0xe75   :  { %v1304_v63 = vmul.f32 %v3934_v59, %v1214_v46 }
 0xed8   :  { %v1307_v60 = vpop.permute.xlu0 %1306 }
 0xed9   :  { %v1309_v62 = vmul.f32 %v3934_v59, %v1307_v60 }
 0xedb   :  { %1311 = vrot.lane.b32.xlu1 %v1309_v62, %s4107_s22 }
 0xf4d   :  { %v1312_v2 = vpop.permute.xlu1 %1311 }
 0xf4e   :  { %v1314_v3 = vadd.f32 %v1312_v2, %v1304_v63 }
 0xf50   :  { %3935 = vtanh.f32 %v1314_v3 }
 0xf5a   :  { %v3936_v4 = vpop.eup %3935 }
 0xf5b   :  { %1317 = vrot.lane.b32.xlu0 %v3936_v4, %s4107_s22 }
 0xfcd   :  { %v1318_v5 = vpop.permute.xlu0 %1317 }
 0xfce   :  { %v1320_v6 = vmul.f32 %v3934_v59, %v1318_v5 }
 0xfd0   :  { %1322 = vrot.lane.b32.xlu1 %v1320_v6, %s4105_s1 }
0x1042   :  { %v4352_v7 = vpop.permute.xlu1 %1322 }
0x1043   :  { %3520 = vmatmul.mubr.msk.f32.vlgmr.msra.gmra.mrb[18].mxu1 %vm142_vm3, %v4352_v7 }
0x1044   :  { %3797 = vmatpush3.bf16.msra.mxu1 %v4234_v15  ;;  %3541 = vmatprep.mubr.msk.f32.mxu1 %vm4102_vm4, %v4101_v16 }
0x1045   :  { %3798 = vmatprep.subr.bf16.mxu1 %v4106_v17 }
0x1048   :  { %3800 = vmatpush3.bf16.msra.mxu1 %v4240_v21 }
0x1049   :  { %3807 = vmatprep.subr.bf16.mxu1 %v4106_v17 }
0x1116   :  { %v1392_v18 = vpop.f32.mrb[18].mxu1 }
0x1117   :  { %v1396_v0 = vadd.f32 %v1392_v18, %v1105_v24  ;;  %v3521_v8 = vpop.f32.mrb[19].mxu1 }
0x1119   :  { %3937 = vtanh.f32 %v1396_v0  ;;  %v3188_v14 = vmul.f32 -1.442695, %v1396_v0 }
0x111b   :  { %3939 = vpow2.f32 %v3188_v14 }
0x1123   :  { %v3938_v9 = vpop.eup %3937 }
0x1124   :  { %1406 = vrot.lane.b32.xlu0 %v3938_v9, %s4107_s22 }
0x1125   :  { %v3940_v19 = vpop.eup %3939 }
0x1126   :  { %v1400_v22 = vadd.f32 1.0, %v3940_v19 }
0x1128   :  { %3941 = vrcp.f32 %v1400_v22 }
0x1132   :  { %v3942_v23 = vpop.eup %3941 }
0x1133   :  { %v1404_v28 = vmul.f32 %v3942_v23, %v1314_v3 }
0x1196   :  { %v1407_v25 = vpop.permute.xlu0 %1406 }
0x1197   :  { %v1409_v26 = vmul.f32 %v3942_v23, %v1407_v25 }
0x1199   :  { %1411 = vrot.lane.b32.xlu1 %v1409_v26, %s4107_s22 }
0x120b   :  { %v1412_v31 = vpop.permute.xlu1 %1411 }
0x120c   :  { %v1414_v39 = vadd.f32 %v1412_v31, %v1404_v28 }
0x120e   :  { %3943 = vtanh.f32 %v1414_v39 }
0x1218   :  { %v3944_v24 = vpop.eup %3943 }
0x1219   :  { %1417 = vrot.lane.b32.xlu0 %v3944_v24, %s4107_s22 }
0x128b   :  { %v1418_v40 = vpop.permute.xlu0 %1417 }
0x128c   :  { %v1420_v41 = vmul.f32 %v3942_v23, %v1418_v40 }
0x128e   :  { %1422 = vrot.lane.b32.xlu1 %v1420_v41, %s4105_s1 }
0x1300   :  { %v4371_v42 = vpop.permute.xlu1 %1422 }
0x1301   :  { %3531 = vmatmul.mubr.msk.f32.vlgmr.msra.gmra.mrb[6].mxu0 %vm142_vm3, %v4371_v42 }
0x1302   :  { %3803 = vmatpush3.bf16.msra.mxu0 %v4234_v15  ;;  %3552 = vmatprep.mubr.msk.f32.mxu0 %vm4102_vm4, %v4101_v16 }
0x1303   :  { %3804 = vmatprep.subr.bf16.mxu0 %v4106_v17 }
0x1306   :  { %3806 = vmatpush3.bf16.msra.mxu0 %v4240_v21 }
0x1307   :  { %3813 = vmatprep.subr.bf16.mxu0 %v4106_v17 }
0x13d4   :  { %v1492_v43 = vpop.f32.mrb[6].mxu0 }
0x13d5   :  { %v1496_v44 = vadd.f32 %v1492_v43, %v1114_v36  ;;  %v3532_v30 = vpop.f32.mrb[7].mxu0 }
0x13d7   :  { %3945 = vtanh.f32 %v1496_v44  ;;  %v3190_v45 = vmul.f32 -1.442695, %v1496_v44 }
0x13d9   :  { %3947 = vpow2.f32 %v3190_v45 }
0x13e1   :  { %v3946_v29 = vpop.eup %3945 }
0x13e2   :  { %1506 = vrot.lane.b32.xlu0 %v3946_v29, %s4107_s22 }
0x13e3   :  { %v3948_v46 = vpop.eup %3947 }
0x13e4   :  { %v1500_v47 = vadd.f32 1.0, %v3948_v46 }
0x13e6   :  { %3949 = vrcp.f32 %v1500_v47 }
0x13f0   :  { %v3950_v48 = vpop.eup %3949 }
0x13f1   :  { %v1504_v52 = vmul.f32 %v3950_v48, %v1414_v39 }
0x1454   :  { %v1507_v49 = vpop.permute.xlu0 %1506 }
0x1455   :  { %v1509_v51 = vmul.f32 %v3950_v48, %v1507_v49 }
0x1457   :  { %1511 = vrot.lane.b32.xlu1 %v1509_v51, %s4107_s22 }
0x14c9   :  { %v1512_v53 = vpop.permute.xlu1 %1511 }
0x14ca   :  { %v1514_v54 = vadd.f32 %v1512_v53, %v1504_v52 }
0x14cc   :  { %3951 = vtanh.f32 %v1514_v54 }
0x14d6   :  { %v3952_v36 = vpop.eup %3951 }
0x14d7   :  { %1517 = vrot.lane.b32.xlu0 %v3952_v36, %s4107_s22 }
0x1549   :  { %v1518_v56 = vpop.permute.xlu0 %1517 }
0x154a   :  { %v1520_v57 = vmul.f32 %v3950_v48, %v1518_v56 }
0x154c   :  { %1522 = vrot.lane.b32.xlu1 %v1520_v57, %s4105_s1 }
0x15be   :  { %v4390_v58 = vpop.permute.xlu1 %1522 }
0x15bf   :  { %3542 = vmatmul.mubr.msk.f32.vlgmr.msra.gmra.mrb[20].mxu1 %vm142_vm3, %v4390_v58 }
0x15c0   :  { %3809 = vmatpush3.bf16.msra.mxu1 %v4234_v15  ;;  %3563 = vmatprep.mubr.msk.f32.mxu1 %vm4102_vm4, %v4101_v16 }
0x15c1   :  { %3810 = vmatprep.subr.bf16.mxu1 %v4106_v17 }
0x15c4   :  { %3812 = vmatpush3.bf16.msra.mxu1 %v4240_v21 }
0x1692   :  { %v1592_v59 = vpop.f32.mrb[20].mxu1 }
0x1693   :  { %v1596_v60 = vadd.f32 %v1592_v59, %v1115_v38  ;;  %v3543_v62 = vpop.f32.mrb[21].mxu1 }
0x1695   :  { %3953 = vtanh.f32 %v1596_v60  ;;  %v3192_v2 = vmul.f32 -1.442695, %v1596_v60 }
0x1697   :  { %3955 = vpow2.f32 %v3192_v2 }
0x169f   :  { %v3954_v63 = vpop.eup %3953 }
0x16a0   :  { %1606 = vrot.lane.b32.xlu0 %v3954_v63, %s4107_s22 }
0x16a1   :  { %v3956_v3 = vpop.eup %3955 }
0x16a2   :  { %v1600_v4 = vadd.f32 1.0, %v3956_v3 }
0x16a4   :  { %3957 = vrcp.f32 %v1600_v4 }
0x16ae   :  { %v3958_v5 = vpop.eup %3957 }
0x16af   :  { %v1604_v0 = vmul.f32 %v3958_v5, %v1514_v54 }
0x1712   :  { %v1607_v6 = vpop.permute.xlu0 %1606 }
0x1713   :  { %v1609_v18 = vmul.f32 %v3958_v5, %v1607_v6 }
0x1715   :  { %1611 = vrot.lane.b32.xlu1 %v1609_v18, %s4107_s22 }
0x1787   :  { %v1612_v8 = vpop.permute.xlu1 %1611 }
0x1788   :  { %v1614_v9 = vadd.f32 %v1612_v8, %v1604_v0 }
0x178a   :  { %3959 = vtanh.f32 %v1614_v9 }
0x1794   :  { %v3960_v32 = vpop.eup %3959 }
0x1795   :  { %1617 = vrot.lane.b32.xlu0 %v3960_v32, %s4107_s22  ;;  %v1970_v32 = vld [vmem:[#allocation2 + $0x170] sm:$0xff] }
0x1807   :  { %v1618_v35 = vpop.permute.xlu0 %1617 }
0x1808   :  { %v1620_v38 = vmul.f32 %v3958_v5, %v1618_v35  ;;  %v1971_v35 = vld [vmem:[#allocation2 + $0x178] sm:$0xff] }
0x180a   :  { %1622 = vrot.lane.b32.xlu1 %v1620_v38, %s4105_s1  ;;  %v3823_v38 = vpack.c.bf16 %v1971_v35, %v1970_v32 }
0x187c   :  { %v4408_v14 = vpop.permute.xlu1 %1622 }
0x187d   :  { %3553 = vmatmul.mubr.msk.f32.vlgmr.msra.gmra.mrb[8].mxu0 %vm142_vm3, %v4408_v14 }
0x187e   :  { %3815 = vmatpush3.bf16.msra.mxu0 %v4234_v15  ;;  %3574 = vmatprep.mubr.msk.f32.mxu0 %vm4102_vm4, %v4101_v16 }
0x187f   :  { %3816 = vmatprep.subr.bf16.mxu0 %v4106_v17 }
0x1882   :  { %3818 = vmatpush3.bf16.msra.mxu0 %v4240_v21 }
0x1883   :  { %3827 = vmatprep.subr.bf16.mxu0 %v4106_v17 }
0x1950   :  { %v1692_v19 = vpop.f32.mrb[8].mxu0 }
0x1951   :  { %v1696_v22 = vadd.f32 %v1692_v19, %v1116_v27  ;;  %v3554_v23 = vpop.f32.mrb[9].mxu0  ;;  %v2110_v19 = vld [vmem:[#allocation2 + $0x180] sm:$0xff] }
0x1952   :  { %v2112_v23 = vld [vmem:[#allocation2 + $0x190] sm:$0xff] }
0x1953   :  { %3961 = vtanh.f32 %v1696_v22  ;;  %v3194_v15 = vmul.f32 -1.442695, %v1696_v22  ;;  %v2111_v22 = vld [vmem:[#allocation2 + $0x188] sm:$0xff] }
0x1955   :  { %3963 = vpow2.f32 %v3194_v15  ;;  %v2113_v15 = vld [vmem:[#allocation2 + $0x198] sm:$0xff] }
0x195d   :  { %v3962_v25 = vpop.eup %3961 }
0x195e   :  { %1706 = vrot.lane.b32.xlu0 %v3962_v25, %s4107_s22  ;;  %v4451_v25 = vpack.c.bf16 %v2111_v22, %v2110_v19 }
0x195f   :  { %v3964_v26 = vpop.eup %3963 }
0x1960   :  { %v1700_v28 = vadd.f32 1.0, %v3964_v26  ;;  %v4455_v26 = vpack.c.bf16 %v2113_v15, %v2112_v23 }
0x1962   :  { %3965 = vrcp.f32 %v1700_v28 }
0x196c   :  { %v3966_v21 = vpop.eup %3965 }
0x196d   :  { %v1704_v24 = vmul.f32 %v3966_v21, %v1614_v9 }
0x19d0   :  { %v1707_v31 = vpop.permute.xlu0 %1706 }
0x19d1   :  { %v1709_v39 = vmul.f32 %v3966_v21, %v1707_v31 }
0x19d3   :  { %1711 = vrot.lane.b32.xlu1 %v1709_v39, %s4107_s22 }
0x1a45   :  { %v1712_v40 = vpop.permute.xlu1 %1711 }
0x1a46   :  { %v1714_v41 = vadd.f32 %v1712_v40, %v1704_v24 }
0x1a48   :  { %3967 = vtanh.f32 %v1714_v41 }
0x1a52   :  { %v3968_v13 = vpop.eup %3967 }
0x1a53   :  { %1717 = vrot.lane.b32.xlu0 %v3968_v13, %s4107_s22  ;;  %v1936_v13 = vsel %vm1926_vm8, %v4390_v58, %v4408_v14 }
0x1ac5   :  { %v1718_v20 = vpop.permute.xlu0 %1717 }
0x1ac6   :  { %v1720_v27 = vmul.f32 %v3966_v21, %v1718_v20 }
0x1ac8   :  { %1722 = vrot.lane.b32.xlu1 %v1720_v27, %s4105_s1  ;;  %v1937_v27 = vsel %vm1926_vm8, %v4408_v14, %v4390_v58 }
0x1b3a   :  { %v4427_v43 = vpop.permute.xlu1 %1722 }
0x1b3b   :  { %3564 = vmatmul.mubr.msk.f32.vlgmr.msra.gmra.mrb[22].mxu1 %vm142_vm3, %v4427_v43  ;;  %v1938_v31 = vsel %vm1926_vm8, %v4427_v43, %v4371_v42  ;;  %v1933_v40 = vsel %vm1926_vm8, %v4371_v42, %v4427_v43  ;;  %v1948_v43 = vrot.slane %v1936_v13, 2 }
0x1c0e   :  { %v1792_v44 = vpop.f32.mrb[22].mxu1 }
0x1c0f   :  { %v1796_v30 = vadd.f32 %v1792_v44, %v1117_v33  ;;  %v3565_v29 = vpop.f32.mrb[23].mxu1 }
0x1c10   :  { %v1945_v29 = vrot.slane %v1933_v40, 4 }
0x1c11   :  { %3969 = vtanh.f32 %v1796_v30  ;;  %v3196_v46 = vmul.f32 -1.442695, %v1796_v30 }
0x1c13   :  { %3971 = vpow2.f32 %v3196_v46 }
0x1c1b   :  { %v3970_v45 = vpop.eup %3969 }
0x1c1c   :  { %1806 = vrot.lane.b32.xlu0 %v3970_v45, %s4107_s22 }
0x1c1d   :  { %v3972_v47 = vpop.eup %3971 }
0x1c1e   :  { %v1800_v48 = vadd.f32 1.0, %v3972_v47 }
0x1c20   :  { %3973 = vrcp.f32 %v1800_v48 }
0x1c2a   :  { %v3974_v49 = vpop.eup %3973 }
0x1c2b   :  { %v1804_v53 = vmul.f32 %v3974_v49, %v1714_v41  ;;  %v1951_v41 = vrot.slane %v1938_v31, 6 }
0x1c2d   :  { %v1965_v47 = vsel %vm1959_vm9, %v1937_v27, %v1951_v41 }
0x1c8e   :  { %v1807_v51 = vpop.permute.xlu0 %1806 }
0x1c8f   :  { %v1809_v52 = vmul.f32 %v3974_v49, %v1807_v51 }
0x1c91   :  { %1811 = vrot.lane.b32.xlu1 %v1809_v52, %s4107_s22  ;;  %v4108_v52 = vmov 1983009808  }
0x1d03   :  { %v1812_v54 = vpop.permute.xlu1 %1811 }
0x1d04   :  { %v1814_v36 = vadd.f32 %v1812_v54, %v1804_v53  ;;  %v2062_v53 = vunpack.c.l.s4 %v4108_v52 }
0x1d06   :  { %3975 = vtanh.f32 %v1814_v36  ;;  %v2063_v54 = vunpack.c.0.s8 %v2062_v53 }
0x1d10   :  { %v3976_v11 = vpop.eup %3975 }
0x1d11   :  { %1817 = vrot.lane.b32.xlu0 %v3976_v11, %s4107_s22  ;;  %v4506_v11 = vsub.s32 %v2063_v54, %v4183_v37 }
0x1d83   :  { %v1818_v12 = vpop.permute.xlu0 %1817 }
0x1d84   :  { %v1820_v33 = vmul.f32 %v3974_v49, %v1818_v12 }
0x1d86   :  { %1822 = vrot.lane.b32.xlu1 %v1820_v33, %s4105_s1 }
0x1df8   :  { %v1823_v56 = vpop.permute.xlu1 %1822 }
0x1df9   :  { %3575 = vmatmul.mubr.msk.f32.vlgmr.msra.gmra.mrb[10].mxu0 %vm142_vm3, %v1823_v56  ;;  %v1939_v39 = vsel %vm1926_vm8, %v1823_v56, %v4352_v7  ;;  %v1930_v24 = vsel %vm1926_vm8, %v4352_v7, %v1823_v56 }
0x1dfa   :  { %3596 = vmatprep.mubr.msk.f32.mxu0 %vm4102_vm4, %v4101_v16  ;;  %3829 = vmatpush3.bf16.msra.mxu0 %v4451_v25  ;;  %v1954_v20 = vrot.slane %v1939_v39, 4  ;;  %v1942_v44 = vrot.slane %v1930_v24, 6 }
0x1dfb   :  { %3830 = vmatprep.subr.bf16.mxu0 %v4106_v17 }
0x1dfc   :  { %v1966_v58 = vsel %vm1961_vm10, %v1965_v47, %v1954_v20 }
0x1dfe   :  { %3832 = vmatpush3.bf16.msra.mxu0 %v4455_v26 }
0x1dff   :  { %3839 = vmatprep.subr.bf16.mxu0 %v4106_v17 }
0x1e01   :  { %3597 = vmatmul.mubr.f32.vlgmr.msra.gmra.mrb[12].mxu0 %v4101_v16 }
0x1e02   :  { %3841 = vmatpush3.bf16.msra.mxu0 %v4451_v25  ;;  %3618 = vmatprep.mubr.msk.f32.mxu0 %vm4102_vm4, %v4101_v16 }
0x1e03   :  { %3842 = vmatprep.subr.bf16.mxu0 %v4106_v17 }
0x1e06   :  { %3844 = vmatpush3.bf16.msra.mxu0 %v4455_v26 }
0x1e07   :  { %3851 = vmatprep.subr.bf16.mxu0 %v4106_v17 }
0x1ecc   :  { %v1892_v57 = vpop.f32.mrb[10].mxu0 }
0x1ecd   :  { %v1896_v59 = vadd.f32 %v1892_v57, %v1118_v34  ;;  %v3576_v60 = vpop.f32.mrb[11].mxu0  ;;  %v3819_v34 = vpack.c.bf16 %v1969_v10, %v1968_v1 }
0x1ecf   :  { %3977 = vtanh.f32 %v1896_v59  ;;  %v3198_v63 = vmul.f32 -1.442695, %v1896_v59  ;;  %3820 = vmatprep.subr.bf16.mxu1 %v3819_v34 }
0x1ed0   :  { %3822 = vmatpush3.bf16.msra.mxu1 %v3819_v34 }
0x1ed1   :  { %3979 = vpow2.f32 %v3198_v63  ;;  %3824 = vmatprep.subr.bf16.mxu1 %v3823_v38 }
0x1ed4   :  { %3826 = vmatpush3.bf16.msra.mxu1 %v3823_v38 }
0x1ed5   :  { %3833 = vmatprep.subr.bf16.mxu1 %v4106_v17 }
0x1ed9   :  { %v3978_v62 = vpop.eup %3977 }
0x1eda   :  { %1906 = vrot.lane.b32.xlu0 %v3978_v62, %s4107_s22 }
0x1edb   :  { %v3980_v2 = vpop.eup %3979 }
0x1edc   :  { %v1900_v3 = vadd.f32 1.0, %v3980_v2 }
0x1ede   :  { %3981 = vrcp.f32 %v1900_v3 }
0x1ee8   :  { %v3982_v4 = vpop.eup %3981 }
0x1ee9   :  { %v1904_v18 = vmul.f32 %v3982_v4, %v1814_v36  ;;  %v3199_v36 = vld [vmem:[%s4749_s3 + $0x7] ss:$0 sm:$0xff] }
0x1f4c   :  { %v1907_v5 = vpop.permute.xlu0 %1906 }
0x1f4d   :  { %v1909_v6 = vmul.f32 %v3982_v4, %v1907_v5 }
0x1f4f   :  { %1911 = vrot.lane.b32.xlu1 %v1909_v6, %s4107_s22 }
0x1fc1   :  { %v1912_v0 = vpop.permute.xlu1 %1911 }
0x1fc2   :  { %v1914_v8 = vadd.f32 %v1912_v0, %v1904_v18 }
0x1fc4   :  { %3983 = vtanh.f32 %v1914_v8 }
0x1fce   :  { %v3984_v9 = vpop.eup %3983 }
0x1fcf   :  { %1917 = vrot.lane.b32.xlu0 %v3984_v9, %s4107_s22 }
0x2041   :  { %v1918_v28 = vpop.permute.xlu0 %1917 }
0x2042   :  { %v1920_v21 = vmul.f32 %v3982_v4, %v1918_v28 }
0x2044   :  { %1923 = vrot.lane.b32.xlu1 %v1920_v21, %s4105_s1 }
0x20b6   :  { %v1924_v30 = vpop.permute.xlu1 %1923 }
0x20b7   :  { %v1927_v7 = vsel %vm1926_vm8, %v4338_v50, %v1924_v30  ;;  %v1940_v42 = vsel %vm1926_vm8, %v1924_v30, %v4338_v50  ;;  %v2180_v50 = vpop.f32.mrb[12].mxu0 }
0x20b8   :  { %v1957_v45 = vrot.slane %v1940_v42, 2  ;;  %v1960_v46 = vsel %vm1959_vm9, %v1927_v7, %v1942_v44  ;;  %v3598_v51 = vpop.f32.mrb[13].mxu0 }
0x20b9   :  { %v1962_v48 = vsel %vm1961_vm10, %v1960_v46, %v1945_v29 }
0x20ba   :  { %v1964_v14 = vsel %vm1963_vm11, %v1962_v48, %v1948_v43  ;;  %v1967_v49 = vsel %vm1963_vm11, %v1966_v58, %v1957_v45 }
0x20bb   :  { %3585 = vmatprep.mubr.msk.f32.mxu1 %vm142_vm3, %v1964_v14 }
0x20bc   :  { %3586 = vmatmul.mubr.msk.f32.vlgmr.msra.gmra.mrb[24].mxu1 %vm142_vm3, %v1967_v49 }
0x20bd   :  { %3835 = vmatpush3.bf16.msra.mxu1 %v4451_v25  ;;  %3607 = vmatprep.mubr.msk.f32.mxu1 %vm4102_vm4, %v4101_v16 }
0x20be   :  { %3836 = vmatprep.subr.bf16.mxu1 %v4106_v17 }
0x20c1   :  { %3838 = vmatpush3.bf16.msra.mxu1 %v4455_v26 }
0x20c2   :  { %3845 = vmatprep.subr.bf16.mxu1 %v4106_v17 }
0x218f   :  { %v3587_v12 = vpop.f32.mrb[24].mxu1 }
0x2190   :  { %v2055_v33 = vadd.f32 %v3587_v12, %v3199_v36  ;;  %v2049_v56 = vpop.f32.mrb[25].mxu1 }
0x2191   :  { %v2050_v57 = vadd.f32 %v3199_v36, %v2049_v56 }
0x2192   :  { %v2077_v59 = vcombine.high %v2055_v33, %v2055_v33  ;;  %v4509_v60 = vrot.slane %v2055_v33, %v4506_v11 }
0x2193   :  { %v2060_v62 = vcombine.high %v2050_v57, %v2050_v57  ;;  %v4512_v63 = vrot.slane %v2050_v57, %v4506_v11 }
0x2194   :  { %v4515_v2 = vrot.slane %v2077_v59, %v4506_v11  ;;  %v4519_v3 = vcombine.high %v4509_v60, %v4509_v60 }
0x2195   :  { %v4522_v37 = vrot.slane %v2060_v62, %v4506_v11  ;;  %v4526_v4 = vcombine.high %v4512_v63, %v4512_v63 }
0x2196   :  { %v4530_v5 = vcombine.high %v4515_v2, %v4515_v2 }
0x2197   :  { %v2103_v6 = vsel %vm4274_vm7, %v4526_v4, %v4515_v2  ;;  %v2104_v18 = vsel %vm4274_vm7, %v4522_v37, %v4519_v3  ;;  %v4542_v0 = vcombine.high %v4522_v37, %v4522_v37  ;;  %v2107_v8 = vsel %vm4274_vm7, %v4519_v3, %v4522_v37 }
0x2198   :  { %v2102_v1 = vsel %vm4274_vm7, %v4512_v63, %v4530_v5  ;;  %v2108_v10 = vsel %vm4274_vm7, %v4515_v2, %v4526_v4  ;;  %v2109_v34 = vsel %vm4274_vm7, %v4530_v5, %v4512_v63 }
0x2199   :  { %v2184_v9 = vadd.f32 %v2180_v50, %v2102_v1  ;;  %v2105_v32 = vsel %vm4274_vm7, %v4542_v0, %v4509_v60  ;;  %v2106_v35 = vsel %vm4274_vm7, %v4509_v60, %v4542_v0 }
0x219b   :  { %3985 = vtanh.f32 %v2184_v9  ;;  %v3202_v19 = vmul.f32 -1.442695, %v2184_v9 }
0x219d   :  { %3987 = vpow2.f32 %v3202_v19 }
0x21a5   :  { %v3986_v38 = vpop.eup %3985 }
0x21a6   :  { %2194 = vrot.lane.b32.xlu0 %v3986_v38, %s4107_s22 }
0x21a7   :  { %v3988_v22 = vpop.eup %3987 }
0x21a8   :  { %v2188_v23 = vadd.f32 1.0, %v3988_v22 }
0x21aa   :  { %3989 = vrcp.f32 %v2188_v23 }
0x21b4   :  { %v3990_v15 = vpop.eup %3989 }
0x21b5   :  { %v2192_v31 = vmul.f32 0.0, %v3990_v15 }
0x2218   :  { %v2195_v28 = vpop.permute.xlu0 %2194 }
0x2219   :  { %v2197_v21 = vmul.f32 %v3990_v15, %v2195_v28 }
0x221b   :  { %2199 = vrot.lane.b32.xlu1 %v2197_v21, %s4107_s22 }
0x228d   :  { %v2200_v39 = vpop.permute.xlu1 %2199 }
0x228e   :  { %v2202_v24 = vadd.f32 %v2200_v39, %v2192_v31 }
0x2290   :  { %3991 = vtanh.f32 %v2202_v24 }
0x229a   :  { %v3992_v40 = vpop.eup %3991 }
0x229b   :  { %2205 = vrot.lane.b32.xlu0 %v3992_v40, %s4107_s22 }
0x230d   :  { %v2206_v41 = vpop.permute.xlu0 %2205 }
0x230e   :  { %v2208_v13 = vmul.f32 %v3990_v15, %v2206_v41 }
0x2310   :  { %2210 = vrot.lane.b32.xlu1 %v2208_v13, %s4105_s1 }
0x2382   :  { %v4572_v20 = vpop.permute.xlu1 %2210 }
0x2383   :  { %3608 = vmatmul.mubr.msk.f32.vlgmr.msra.gmra.mrb[26].mxu1 %vm142_vm3, %v4572_v20 }
0x2384   :  { %3847 = vmatpush3.bf16.msra.mxu1 %v4451_v25  ;;  %3629 = vmatprep.mubr.msk.f32.mxu1 %vm4102_vm4, %v4101_v16 }
0x2385   :  { %3848 = vmatprep.subr.bf16.mxu1 %v4106_v17 }
0x2388   :  { %3850 = vmatpush3.bf16.msra.mxu1 %v4455_v26 }
0x2389   :  { %3857 = vmatprep.subr.bf16.mxu1 %v4106_v17 }
0x2456   :  { %v2280_v27 = vpop.f32.mrb[26].mxu1 }
0x2457   :  { %v2284_v44 = vadd.f32 %v2280_v27, %v2103_v6  ;;  %v3609_v30 = vpop.f32.mrb[27].mxu1 }
0x2459   :  { %3993 = vtanh.f32 %v2284_v44  ;;  %v3204_v7 = vmul.f32 -1.442695, %v2284_v44 }
0x245b   :  { %3995 = vpow2.f32 %v3204_v7 }
0x2463   :  { %v3994_v29 = vpop.eup %3993 }
0x2464   :  { %2294 = vrot.lane.b32.xlu0 %v3994_v29, %s4107_s22 }
0x2465   :  { %v3996_v42 = vpop.eup %3995 }
0x2466   :  { %v2288_v43 = vadd.f32 1.0, %v3996_v42 }
0x2468   :  { %3997 = vrcp.f32 %v2288_v43 }
0x2472   :  { %v3998_v45 = vpop.eup %3997 }
0x2473   :  { %v2292_v48 = vmul.f32 %v3998_v45, %v2202_v24 }
0x24d6   :  { %v2295_v46 = vpop.permute.xlu0 %2294 }
0x24d7   :  { %v2297_v47 = vmul.f32 %v3998_v45, %v2295_v46 }
0x24d9   :  { %2299 = vrot.lane.b32.xlu1 %v2297_v47, %s4107_s22 }
0x254b   :  { %v2300_v58 = vpop.permute.xlu1 %2299 }
0x254c   :  { %v2302_v14 = vadd.f32 %v2300_v58, %v2292_v48 }
0x254e   :  { %3999 = vtanh.f32 %v2302_v14 }
0x2558   :  { %v4000_v49 = vpop.eup %3999 }
0x2559   :  { %2305 = vrot.lane.b32.xlu0 %v4000_v49, %s4107_s22 }
0x25cb   :  { %v2306_v50 = vpop.permute.xlu0 %2305 }
0x25cc   :  { %v2308_v51 = vmul.f32 %v3998_v45, %v2306_v50 }
0x25ce   :  { %2310 = vrot.lane.b32.xlu1 %v2308_v51, %s4105_s1 }
0x2640   :  { %v4586_v52 = vpop.permute.xlu1 %2310 }
0x2641   :  { %3619 = vmatmul.mubr.msk.f32.vlgmr.msra.gmra.mrb[14].mxu0 %vm142_vm3, %v4586_v52 }
0x2642   :  { %3853 = vmatpush3.bf16.msra.mxu0 %v4451_v25  ;;  %3640 = vmatprep.mubr.msk.f32.mxu0 %vm4102_vm4, %v4101_v16 }
0x2643   :  { %3854 = vmatprep.subr.bf16.mxu0 %v4106_v17 }
0x2646   :  { %3856 = vmatpush3.bf16.msra.mxu0 %v4455_v26 }
0x2647   :  { %3863 = vmatprep.subr.bf16.mxu0 %v4106_v17 }
0x2714   :  { %v2380_v53 = vpop.f32.mrb[14].mxu0 }
0x2715   :  { %v2384_v54 = vadd.f32 %v2380_v53, %v2104_v18  ;;  %v3620_v36 = vpop.f32.mrb[15].mxu0 }
0x2717   :  { %4001 = vtanh.f32 %v2384_v54  ;;  %v3206_v33 = vmul.f32 -1.442695, %v2384_v54 }
0x2719   :  { %4003 = vpow2.f32 %v3206_v33 }
0x2721   :  { %v4002_v12 = vpop.eup %4001 }
0x2722   :  { %2394 = vrot.lane.b32.xlu0 %v4002_v12, %s4107_s22 }
0x2723   :  { %v4004_v56 = vpop.eup %4003 }
0x2724   :  { %v2388_v57 = vadd.f32 1.0, %v4004_v56 }
0x2726   :  { %4005 = vrcp.f32 %v2388_v57 }
0x2730   :  { %v4006_v59 = vpop.eup %4005 }
0x2731   :  { %v2392_v1 = vmul.f32 %v4006_v59, %v2302_v14 }
0x2794   :  { %v2395_v62 = vpop.permute.xlu0 %2394 }
0x2795   :  { %v2397_v6 = vmul.f32 %v4006_v59, %v2395_v62 }
0x2797   :  { %2399 = vrot.lane.b32.xlu1 %v2397_v6, %s4107_s22 }
0x2809   :  { %v2400_v9 = vpop.permute.xlu1 %2399 }
0x280a   :  { %v2402_v38 = vadd.f32 %v2400_v9, %v2392_v1 }
0x280c   :  { %4007 = vtanh.f32 %v2402_v38 }
0x2816   :  { %v4008_v18 = vpop.eup %4007 }
0x2817   :  { %2405 = vrot.lane.b32.xlu0 %v4008_v18, %s4107_s22 }
0x2889   :  { %v2406_v19 = vpop.permute.xlu0 %2405 }
0x288a   :  { %v2408_v22 = vmul.f32 %v4006_v59, %v2406_v19 }
0x288c   :  { %2410 = vrot.lane.b32.xlu1 %v2408_v22, %s4105_s1 }
0x28fe   :  { %v4605_v23 = vpop.permute.xlu1 %2410 }
0x28ff   :  { %3630 = vmatmul.mubr.msk.f32.vlgmr.msra.gmra.mrb[28].mxu1 %vm142_vm3, %v4605_v23 }
0x2900   :  { %3859 = vmatpush3.bf16.msra.mxu1 %v4451_v25  ;;  %3651 = vmatprep.mubr.msk.f32.mxu1 %vm4102_vm4, %v4101_v16 }
0x2901   :  { %3860 = vmatprep.subr.bf16.mxu1 %v4106_v17 }
0x2904   :  { %3862 = vmatpush3.bf16.msra.mxu1 %v4455_v26 }
0x2905   :  { %3869 = vmatprep.subr.bf16.mxu1 %v4106_v17 }
0x29d2   :  { %v2480_v15 = vpop.f32.mrb[28].mxu1 }
0x29d3   :  { %v2484_v28 = vadd.f32 %v2480_v15, %v2105_v32  ;;  %v3631_v21 = vpop.f32.mrb[29].mxu1 }
0x29d5   :  { %4009 = vtanh.f32 %v2484_v28  ;;  %v3208_v39 = vmul.f32 -1.442695, %v2484_v28 }
0x29d7   :  { %4011 = vpow2.f32 %v3208_v39 }
0x29df   :  { %v4010_v31 = vpop.eup %4009 }
0x29e0   :  { %2494 = vrot.lane.b32.xlu0 %v4010_v31, %s4107_s22 }
0x29e1   :  { %v4012_v24 = vpop.eup %4011 }
0x29e2   :  { %v2488_v40 = vadd.f32 1.0, %v4012_v24 }
0x29e4   :  { %4013 = vrcp.f32 %v2488_v40 }
0x29ee   :  { %v4014_v41 = vpop.eup %4013 }
0x29ef   :  { %v2492_v44 = vmul.f32 %v4014_v41, %v2402_v38 }
0x2a52   :  { %v2495_v13 = vpop.permute.xlu0 %2494 }
0x2a53   :  { %v2497_v27 = vmul.f32 %v4014_v41, %v2495_v13 }
0x2a55   :  { %2499 = vrot.lane.b32.xlu1 %v2497_v27, %s4107_s22 }
0x2ac7   :  { %v2500_v30 = vpop.permute.xlu1 %2499 }
0x2ac8   :  { %v2502_v29 = vadd.f32 %v2500_v30, %v2492_v44 }
0x2aca   :  { %4015 = vtanh.f32 %v2502_v29 }
0x2ad4   :  { %v4016_v32 = vpop.eup %4015 }
0x2ad5   :  { %2505 = vrot.lane.b32.xlu0 %v4016_v32, %s4107_s22 }
0x2b47   :  { %v2506_v7 = vpop.permute.xlu0 %2505 }
0x2b48   :  { %v2508_v42 = vmul.f32 %v4014_v41, %v2506_v7 }
0x2b4a   :  { %2510 = vrot.lane.b32.xlu1 %v2508_v42, %s4105_s1 }
0x2bbc   :  { %v4624_v43 = vpop.permute.xlu1 %2510 }
0x2bbd   :  { %3641 = vmatmul.mubr.msk.f32.vlgmr.msra.gmra.mrb[16].mxu0 %vm142_vm3, %v4624_v43 }
0x2bbe   :  { %3865 = vmatpush3.bf16.msra.mxu0 %v4451_v25  ;;  %3662 = vmatprep.mubr.msk.f32.mxu0 %vm4102_vm4, %v4101_v16 }
0x2bbf   :  { %3866 = vmatprep.subr.bf16.mxu0 %v4106_v17 }
0x2bc2   :  { %3868 = vmatpush3.bf16.msra.mxu0 %v4455_v26 }
0x2bc3   :  { %3875 = vmatprep.subr.bf16.mxu0 %v4106_v17 }
0x2c90   :  { %v2580_v45 = vpop.f32.mrb[16].mxu0 }
0x2c91   :  { %v2584_v46 = vadd.f32 %v2580_v45, %v2106_v35  ;;  %v3642_v47 = vpop.f32.mrb[17].mxu0 }
0x2c93   :  { %4017 = vtanh.f32 %v2584_v46  ;;  %v3210_v58 = vmul.f32 -1.442695, %v2584_v46 }
0x2c95   :  { %4019 = vpow2.f32 %v3210_v58 }
0x2c9d   :  { %v4018_v48 = vpop.eup %4017 }
0x2c9e   :  { %2594 = vrot.lane.b32.xlu0 %v4018_v48, %s4107_s22 }
0x2c9f   :  { %v4020_v14 = vpop.eup %4019 }
0x2ca0   :  { %v2588_v49 = vadd.f32 1.0, %v4020_v14 }
0x2ca2   :  { %4021 = vrcp.f32 %v2588_v49 }
0x2cac   :  { %v4022_v50 = vpop.eup %4021 }
0x2cad   :  { %v2592_v54 = vmul.f32 %v4022_v50, %v2502_v29 }
0x2d10   :  { %v2595_v51 = vpop.permute.xlu0 %2594 }
0x2d11   :  { %v2597_v53 = vmul.f32 %v4022_v50, %v2595_v51 }
0x2d13   :  { %2599 = vrot.lane.b32.xlu1 %v2597_v53, %s4107_s22 }
0x2d85   :  { %v2600_v36 = vpop.permute.xlu1 %2599 }
0x2d86   :  { %v2602_v12 = vadd.f32 %v2600_v36, %v2592_v54  ;;  %v3052_v54 = vld [vmem:[#allocation2 + $0x1a0] sm:$0xff]  ;;  %v3053_v36 = vld [vmem:[#allocation2 + $0x1a8] sm:$0xff] }
0x2d88   :  { %4023 = vtanh.f32 %v2602_v12 }
0x2d92   :  { %v4024_v60 = vpop.eup %4023 }
0x2d93   :  { %2605 = vrot.lane.b32.xlu0 %v4024_v60, %s4107_s22  ;;  %v3876_v60 = vpack.c.bf16 %v3053_v36, %v3052_v54 }
0x2e05   :  { %v2606_v0 = vpop.permute.xlu0 %2605 }
0x2e06   :  { %v2608_v35 = vmul.f32 %v4022_v50, %v2606_v0  ;;  %v3055_v0 = vld [vmem:[#allocation2 + $0x1b8] sm:$0xff] }
0x2e08   :  { %2610 = vrot.lane.b32.xlu1 %v2608_v35, %s4105_s1 }
0x2e7a   :  { %v4643_v33 = vpop.permute.xlu1 %2610 }
0x2e7b   :  { %3652 = vmatmul.mubr.msk.f32.vlgmr.msra.gmra.mrb[30].mxu1 %vm142_vm3, %v4643_v33 }
0x2e7c   :  { %3871 = vmatpush3.bf16.msra.mxu1 %v4451_v25  ;;  %3673 = vmatprep.mubr.msk.f32.mxu1 %vm4102_vm4, %v4101_v16 }
0x2e7d   :  { %3872 = vmatprep.subr.bf16.mxu1 %v4106_v17 }
0x2e80   :  { %3874 = vmatpush3.bf16.msra.mxu1 %v4455_v26 }
0x2f4e   :  { %v2680_v56 = vpop.f32.mrb[30].mxu1 }
0x2f4f   :  { %v2684_v57 = vadd.f32 %v2680_v56, %v2107_v8  ;;  %v3653_v59 = vpop.f32.mrb[31].mxu1  ;;  %v3056_v56 = vld [vmem:[#allocation2 + $0x1c0] sm:$0xff] }
0x2f51   :  { %4025 = vtanh.f32 %v2684_v57  ;;  %v3212_v25 = vmul.f32 -1.442695, %v2684_v57  ;;  %v3057_v57 = vld [vmem:[#allocation2 + $0x1c8] sm:$0xff] }
0x2f52   :  { %v3882_v59 = vpack.c.bf16 %v3057_v57, %v3056_v56  ;;  %v3217_v57 = vld [vmem:[%s4749_s3 + $0x8] ss:$0 sm:$0xff] }
0x2f53   :  { %4027 = vpow2.f32 %v3212_v25  ;;  %v3059_v25 = vld [vmem:[#allocation2 + $0x1d8] sm:$0xff] }
0x2f5b   :  { %v4026_v62 = vpop.eup %4025 }
0x2f5c   :  { %2694 = vrot.lane.b32.xlu0 %v4026_v62, %s4107_s22  ;;  %v3058_v62 = vld [vmem:[#allocation2 + $0x1d0] sm:$0xff] }
0x2f5d   :  { %v4028_v6 = vpop.eup %4027 }
0x2f5e   :  { %v2688_v1 = vadd.f32 1.0, %v4028_v6  ;;  %v3885_v6 = vpack.c.bf16 %v3059_v25, %v3058_v62 }
0x2f60   :  { %4029 = vrcp.f32 %v2688_v1 }
0x2f6a   :  { %v4030_v9 = vpop.eup %4029 }
0x2f6b   :  { %v2692_v18 = vmul.f32 %v4030_v9, %v2602_v12  ;;  %v3054_v12 = vld [vmem:[#allocation2 + $0x1b0] sm:$0xff] }
0x2f6c   :  { %v3879_v35 = vpack.c.bf16 %v3055_v0, %v3054_v12 }
0x2fce   :  { %v2695_v38 = vpop.permute.xlu0 %2694 }
0x2fcf   :  { %v2697_v26 = vmul.f32 %v4030_v9, %v2695_v38 }
0x2fd1   :  { %2699 = vrot.lane.b32.xlu1 %v2697_v26, %s4107_s22 }
0x3043   :  { %v2700_v19 = vpop.permute.xlu1 %2699 }
0x3044   :  { %v2702_v22 = vadd.f32 %v2700_v19, %v2692_v18 }
0x3046   :  { %4031 = vtanh.f32 %v2702_v22 }
0x3050   :  { %v4032_v3 = vpop.eup %4031 }
0x3051   :  { %2705 = vrot.lane.b32.xlu0 %v4032_v3, %s4107_s22 }
0x30c3   :  { %v2706_v37 = vpop.permute.xlu0 %2705 }
0x30c4   :  { %v2708_v8 = vmul.f32 %v4030_v9, %v2706_v37  ;;  %v2924_v37 = vsel %vm1926_vm8, %v4643_v33, %v4624_v43 }
0x30c6   :  { %2710 = vrot.lane.b32.xlu1 %v2708_v8, %s4105_s1 }
0x3138   :  { %v4661_v15 = vpop.permute.xlu1 %2710 }
0x3139   :  { %3663 = vmatmul.mubr.msk.f32.vlgmr.msra.gmra.mrb[18].mxu0 %vm142_vm3, %v4661_v15  ;;  %v2925_v1 = vsel %vm1926_vm8, %v4661_v15, %v4605_v23  ;;  %v2920_v26 = vsel %vm1926_vm8, %v4605_v23, %v4661_v15 }
0x313a   :  { %3692 = vmatprep.mubr.msk.f32.mxu0 %vm4102_vm4, %v4101_v16  ;;  %3877 = vmatpush3.bf16.msra.mxu0 %v3876_v60  ;;  %v2954_v18 = vrot.slane %v2925_v1, 6  ;;  %v2948_v8 = vrot.slane %v2920_v26, 4 }
0x313b   :  { %3878 = vmatprep.subr.bf16.mxu0 %v4106_v17 }
0x313c   :  { %v2965_v15 = vsel %vm1959_vm9, %v2924_v37, %v2954_v18 }
0x313e   :  { %3880 = vmatpush3.bf16.msra.mxu0 %v3879_v35 }
0x313f   :  { %3881 = vmatprep.subr.bf16.mxu0 %v4106_v17 }
0x3142   :  { %3883 = vmatpush3.bf16.msra.mxu0 %v3882_v59 }
0x3143   :  { %3884 = vmatprep.subr.bf16.mxu0 %v4106_v17  ;;  %v2923_v17 = vsel %vm1926_vm8, %v4624_v43, %v4643_v33 }
0x3144   :  { %v2951_v23 = vrot.slane %v2923_v17, 2 }
0x3146   :  { %3886 = vmatpush3.bf16.msra.mxu0 %v3885_v6 }
0x320c   :  { %v2780_v28 = vpop.f32.mrb[18].mxu0 }
0x320d   :  { %v2784_v21 = vadd.f32 %v2780_v28, %v2108_v10  ;;  %v3664_v31 = vpop.f32.mrb[19].mxu0 }
0x320f   :  { %4033 = vtanh.f32 %v2784_v21  ;;  %v3214_v24 = vmul.f32 -1.442695, %v2784_v21 }
0x3211   :  { %4035 = vpow2.f32 %v3214_v24 }
0x3219   :  { %v4034_v39 = vpop.eup %4033 }
0x321a   :  { %2794 = vrot.lane.b32.xlu0 %v4034_v39, %s4107_s22 }
0x321b   :  { %v4036_v40 = vpop.eup %4035 }
0x321c   :  { %v2788_v41 = vadd.f32 1.0, %v4036_v40 }
0x321e   :  { %4037 = vrcp.f32 %v2788_v41 }
0x3228   :  { %v4038_v13 = vpop.eup %4037 }
0x3229   :  { %v2792_v44 = vmul.f32 %v4038_v13, %v2702_v22 }
0x328c   :  { %v2795_v27 = vpop.permute.xlu0 %2794 }
0x328d   :  { %v2797_v16 = vmul.f32 %v4038_v13, %v2795_v27 }
0x328f   :  { %2799 = vrot.lane.b32.xlu1 %v2797_v16, %s4107_s22 }
0x3301   :  { %v2800_v30 = vpop.permute.xlu1 %2799 }
0x3302   :  { %v2802_v29 = vadd.f32 %v2800_v30, %v2792_v44 }
0x3304   :  { %4039 = vtanh.f32 %v2802_v29 }
0x330e   :  { %v4040_v2 = vpop.eup %4039 }
0x330f   :  { %2805 = vrot.lane.b32.xlu0 %v4040_v2, %s4107_s22 }
0x3381   :  { %v2806_v4 = vpop.permute.xlu0 %2805 }
0x3382   :  { %v2808_v10 = vmul.f32 %v4038_v13, %v2806_v4 }
0x3384   :  { %2810 = vrot.lane.b32.xlu1 %v2808_v10, %s4105_s1 }
0x33f6   :  { %v2811_v32 = vpop.permute.xlu1 %2810 }
0x33f7   :  { %3674 = vmatmul.mubr.msk.f32.vlgmr.msra.gmra.mrb[32].mxu1 %vm142_vm3, %v2811_v32  ;;  %v2926_v9 = vsel %vm1926_vm8, %v2811_v32, %v4586_v52  ;;  %v2917_v38 = vsel %vm1926_vm8, %v4586_v52, %v2811_v32 }
0x33f8   :  { %v2957_v19 = vrot.slane %v2926_v9, 4  ;;  %v2945_v22 = vrot.slane %v2917_v38, 6 }
0x33fa   :  { %v2966_v39 = vsel %vm1961_vm10, %v2965_v15, %v2957_v19 }
0x34ca   :  { %v2880_v7 = vpop.f32.mrb[32].mxu1 }
0x34cb   :  { %v2884_v42 = vadd.f32 %v2880_v7, %v2109_v34  ;;  %v3675_v45 = vpop.f32.mrb[33].mxu1 }
0x34cd   :  { %4041 = vtanh.f32 %v2884_v42  ;;  %v3216_v47 = vmul.f32 -1.442695, %v2884_v42 }
0x34cf   :  { %4043 = vpow2.f32 %v3216_v47 }
0x34d7   :  { %v4042_v46 = vpop.eup %4041 }
0x34d8   :  { %2894 = vrot.lane.b32.xlu0 %v4042_v46, %s4107_s22 }
0x34d9   :  { %v4044_v48 = vpop.eup %4043 }
0x34da   :  { %v2888_v58 = vadd.f32 1.0, %v4044_v48 }
0x34dc   :  { %4045 = vrcp.f32 %v2888_v58 }
0x34e6   :  { %v4046_v14 = vpop.eup %4045 }
0x34e7   :  { %v2892_v61 = vmul.f32 %v4046_v14, %v2802_v29 }
0x354a   :  { %v2895_v49 = vpop.permute.xlu0 %2894 }
0x354b   :  { %v2897_v50 = vmul.f32 %v4046_v14, %v2895_v49 }
0x354d   :  { %2899 = vrot.lane.b32.xlu1 %v2897_v50, %s4107_s22 }
0x35bf   :  { %v2900_v51 = vpop.permute.xlu1 %2899 }
0x35c0   :  { %v2902_v53 = vadd.f32 %v2900_v51, %v2892_v61 }
0x35c2   :  { %4047 = vtanh.f32 %v2902_v53 }
0x35cc   :  { %v4048_v63 = vpop.eup %4047 }
0x35cd   :  { %2905 = vrot.lane.b32.xlu0 %v4048_v63, %s4107_s22 }
0x363f   :  { %v2906_v5 = vpop.permute.xlu0 %2905 }
0x3640   :  { %v2908_v34 = vmul.f32 %v4046_v14, %v2906_v5 }
0x3642   :  { %2911 = vrot.lane.b32.xlu1 %v2908_v34, %s4105_s1 }
0x36b4   :  { %v2912_v3 = vpop.permute.xlu1 %2911 }
0x36b5   :  { %v2914_v52 = vsel %vm1926_vm8, %v4572_v20, %v2912_v3  ;;  %v2927_v28 = vsel %vm1926_vm8, %v2912_v3, %v4572_v20 }
0x36b6   :  { %v2960_v21 = vrot.slane %v2927_v28, 2  ;;  %v2962_v31 = vsel %vm1959_vm9, %v2914_v52, %v2945_v22 }
0x36b7   :  { %v2963_v24 = vsel %vm1961_vm10, %v2962_v31, %v2948_v8 }
0x36b8   :  { %v2964_v40 = vsel %vm1963_vm11, %v2963_v24, %v2951_v23  ;;  %v2967_v43 = vsel %vm1963_vm11, %v2966_v39, %v2960_v21 }
0x36b9   :  { %v2970_v33 = vcombine.high %v2964_v40, %v2964_v40  ;;  %v2977_v41 = vrot.slane %v2964_v40, %v4506_v11  ;;  %v2987_v13 = vcombine.high %v2967_v43, %v2967_v43  ;;  %v2994_v20 = vrot.slane %v2967_v43, %v4506_v11 }
0x36bb   :  { %v2984_v27 = vrot.slane %v2970_v33, %v4506_v11  ;;  %v2985_v16 = vcombine.high %v2977_v41, %v2977_v41  ;;  %v3001_v44 = vrot.slane %v2987_v13, %v4506_v11  ;;  %v3002_v30 = vcombine.high %v2994_v20, %v2994_v20 }
0x36bc   :  { %v3012_v29 = vmax.f32 %v2977_v41, 0.0  ;;  %v3016_v2 = vmax.f32 %v2994_v20, 0.0 }
0x36bd   :  { %v3003_v4 = vcombine.high %v3001_v44, %v3001_v44  ;;  %v3013_v10 = vmax.f32 %v2985_v16, 0.0  ;;  %v3017_v32 = vmax.f32 %v3002_v30, 0.0  ;;  %v3018_v7 = vmax.f32 %v3001_v44, 0.0 }
0x36be   :  { %v2986_v42 = vcombine.high %v2984_v27, %v2984_v27  ;;  %v3014_v45 = vmax.f32 %v2984_v27, 0.0  ;;  %v3021_v47 = vsel %vm3020_vm12, %v3012_v29, -inf  ;;  %v3025_v50 = vsel %vm3020_vm12, %v3016_v2, -inf }
0x36bf   :  { %v3019_v46 = vmax.f32 %v3003_v4, 0.0  ;;  %v3022_v48 = vsel %vm3020_vm12, %v3013_v10, -inf  ;;  %v3027_v58 = vsel %vm3020_vm12, %v3017_v32, -inf  ;;  %v3029_v61 = vsel %vm3020_vm12, %v3018_v7, -inf }
0x36c0   :  { %v3015_v14 = vmax.f32 %v2986_v42, 0.0  ;;  %v3023_v49 = vsel %vm3020_vm12, %v3014_v45, -inf  ;;  %v3028_v51 = vmax.f32 %v3022_v48, %v3027_v58  ;;  %v3026_v5 = vmax.f32 %v3021_v47, %v3025_v50 }
0x36c1   :  { %v3031_v53 = vsel %vm3020_vm12, %v3019_v46, -inf  ;;  %v3030_v34 = vmax.f32 %v3023_v49, %v3029_v61 }
0x36c2   :  { %v3024_v63 = vsel %vm3020_vm12, %v3015_v14, -inf  ;;  %v3033_v36 = vmax.f32 %v3026_v5, %v3028_v51 }
0x36c3   :  { %v3032_v54 = vmax.f32 %v3024_v63, %v3031_v53 }
0x36c5   :  { %v3034_v12 = vmax.f32 %v3030_v34, %v3032_v54 }
0x36c7   :  { %v3035_v60 = vmax.f32 %v3033_v36, %v3034_v12 }
0x36c9   :  { %v3047_v0 = vrot.slane %v3035_v60, %v4506_v11 }
0x36cb   :  { %3048 = vrot.lane.b32.xlu0 %v3047_v0, %s4107_s22 }
0x373d   :  { %v3049_v35 = vpop.permute.xlu0 %3048 }
0x373e   :  { %v3051_v56 = vsel %vm142_vm3, %v4268_v55, %v3049_v35 }
0x373f   :  { %3693 = vmatmul.mubr.msk.f32.vlgmr.msra.gmra.mrb[20].mxu0 %vm3065_vm13, %v3051_v56 }
0x3812   :  { %v3135_v59 = vpop.f32.mrb[20].mxu0 }
0x3813   :  { %v3136_v62 = vadd.f32 %v3217_v57, %v3135_v59  ;;  %v3694_v25 = vpop.f32.mrb[21].mxu0 }
0x3815   :  { %3140 = vst.msk [vmem:[#allocation5] sm:$0x3] %vm3139_vm14, %v3136_v62 }
0x3816   :  { %4082 = shalt.err (!%p4079_p12)
}
0x3817   :  { %s4083_s6 = scalar_lea.hbm %s4750_s4, 32 }
0x3818   :  { %p4084_p13 = scmp.ne.s32.totalorder %s4750_s4, %s4083_s6  ;;  %p4087_p0 = scmp.lt.u32.totalorder %s4083_s6, %s4750_s4 }
0x381a   :  { %p4089_p1 = pnand %p4087_p0, %p4084_p13 }
0x381c   :  { %4092 = shalt.err (!%p4089_p1)
}
0x381d   :  { %3150 = dma.vmem_to_hbm [thread:$0]  %s3148_s28, 32, %s4750_s4, [#allocation4]  }
0x381e   :  { %4095 = dma.done.wait [#allocation4], 32  }
0x381f   :  { %4096 = vsyncadd [#allocation4], 4294967264 }
0x3820   :  { %3154 = vsyncpa [#allocation3], 1 }
0x3821   :  { %3155 = vsyncpa [#allocation4], 1 }

</bundles_post_ra>
